<compile_context>
chip_gen: v6e
topology: v6e:2x2x1
jax: 0.10.0
libtpu: 0.0.40
codegen_flags: <defaults>
</compile_context>

<pallas_src>
import functools

import jax
import jax.numpy as jnp
from jax.experimental import pallas as pl
from jax.experimental.pallas import tpu as pltpu

IN_DIM = 768
HID_DIM = 512


def critic_kernel(x_ref, w1_ref, b1_ref, w2_ref, b2_ref, o_ref):
    """One batch tile of: Linear(768,512) -> ReLU -> (Dropout=identity) -> Linear(512,1).

    x_ref : (block_m, 768)  f32    state tile (cast to bf16 in-register for the MXU)
    w1_ref: (768, 512)      bf16   first-layer weight, [in, out] layout (resident)
    b1_ref: (1, 512)        f32
    w2_ref: (1, 512)        f32    second-layer weight row (torch weight is [1, 512])
    b2_ref: (1,)            f32    second-layer bias, SMEM scalar
    o_ref : (1, block_m)    f32    lane-dense output row for this tile
    """
    # First layer on the MXU: bf16 inputs, f32 accumulation.  The f32->bf16 cast of
    # the state happens on the VPU (ample slack) instead of an extra HBM pass.
    x = x_ref[...].astype(jnp.bfloat16)
    h = jnp.dot(x, w1_ref[...], preferred_element_type=jnp.float32)
    h = jnp.maximum(h + b1_ref[...], 0.0)  # bias + ReLU (f32, VPU)

    # Dropout -> identity (eval mode).
    # TODO(synk): training-mode dropout would use pltpu.prng_seed / prng_random_bits.

    # Second layer (512 -> 1) as a VPU multiply + XLU lane reduction instead of an
    # MXU matmul with a single output column.
    v = jnp.sum(h * w2_ref[...], axis=-1)          # (block_m,)
    o_ref[...] = (v[None, :] + b2_ref[0]).astype(o_ref.dtype)


def prepare_critic_params(w1, b1, w2, b2):
    """One-time (model-load) parameter conversion so the jitted forward does no casts.

    Parameter layout (vs. torch):
      w1: [768, 512]  ([in, out]; transpose of torch Linear(768, 512).weight)
      b1: [512]
      w2: [1, 512] or [512]  (torch Linear(512, 1).weight is already [1, 512])
      b2: [1] or scalar
    """
    return (
        jnp.asarray(w1).astype(jnp.bfloat16),                      # (768, 512) bf16
        jnp.asarray(b1).reshape(1, HID_DIM).astype(jnp.float32),   # (1, 512)
        jnp.asarray(w2).reshape(1, HID_DIM).astype(jnp.float32),   # (1, 512)
        jnp.asarray(b2).reshape(1).astype(jnp.float32),            # (1,) SMEM scalar
    )


def _pick_block_m(B: int) -> int:
    """Adaptive batch-tile size (always a multiple of 128 -> lane-dense output)."""
    Bp = ((B + 127) // 128) * 128
    if Bp <= 128:
        return 128                       # single tile; minimal per-step overhead
    # Aim for exactly 2 tiles (megacore sharding on v7x; 2 cheap steps elsewhere),
    # capped at 512 rows/tile so VMEM stays tiny and the pipeline stays balanced.
    return min(((Bp // 2 + 127) // 128) * 128, 512)


@functools.partial(jax.jit, static_argnames=("block_m",))
def critic_forward(state, w1_bf16, b1_row, w2_row, b2_vec, *, block_m=None):
    """state: [B, 768] f32 -> value: [B] (matches torch `.squeeze()` on (B, 1))."""
    B, D = state.shape
    assert D == IN_DIM
    if block_m is None:
        block_m = _pick_block_m(B)

    num_tiles = pl.cdiv(B, block_m)
    Bp = num_tiles * block_m             # output slab width (>= B); extra cols sliced off

    cost = pl.CostEstimate(
        flops=2 * B * IN_DIM * HID_DIM + 3 * B * HID_DIM,
        transcendentals=0,
        bytes_accessed=(
            B * IN_DIM * 4              # f32 state stream (cast to bf16 in-kernel)
            + IN_DIM * HID_DIM * 2      # resident bf16 W1
            + 2 * HID_DIM * 4 + 4       # b1 row, w2 row, b2
            + Bp * 4                    # f32 output row
        ),
    )

    out = pl.pallas_call(
        critic_kernel,
        out_shape=jax.ShapeDtypeStruct((1, Bp), jnp.float32),
        grid_spec=pltpu.PrefetchScalarGridSpec(
            num_scalar_prefetch=0,
            grid=(num_tiles,),
            in_specs=[
                pl.BlockSpec((block_m, IN_DIM), lambda i: (i, 0)),   # state tile (ragged last tile OK)
                pl.BlockSpec((IN_DIM, HID_DIM), lambda i: (0, 0)),   # W1 (resident)
                pl.BlockSpec((1, HID_DIM), lambda i: (0, 0)),        # b1
                pl.BlockSpec((1, HID_DIM), lambda i: (0, 0)),        # W2 row
                pl.BlockSpec(memory_space=pltpu.MemorySpace.SMEM),   # b2 scalar
            ],
            out_specs=pl.BlockSpec((1, block_m), lambda i: (0, i)),
        ),
        compiler_params=pltpu.CompilerParams(
            dimension_semantics=("parallel",),
        ),
        cost_estimate=cost,
    )(state, w1_bf16, b1_row, w2_row, b2_vec)

    # torch: .squeeze() on shape (B, 1) -> (B,); also drops any ragged-tile garbage rows.
    return out[0, :B]


def init_params(key):
    """Deterministic init mimicking nn.Linear defaults (uniform +/- 1/sqrt(fan_in))."""
    k1, k2, k3, k4 = jax.random.split(key, 4)
    bound1 = 1.0 / (IN_DIM ** 0.5)
    bound2 = 1.0 / (HID_DIM ** 0.5)
    w1 = jax.random.uniform(k1, (IN_DIM, HID_DIM), jnp.float32, -bound1, bound1)
    b1 = jax.random.uniform(k2, (HID_DIM,), jnp.float32, -bound1, bound1)
    w2 = jax.random.uniform(k3, (1, HID_DIM), jnp.float32, -bound2, bound2)
    b2 = jax.random.uniform(k4, (1,), jnp.float32, -bound2, bound2)
    return w1, b1, w2, b2


def _reference(state, w1, b1, w2, b2):
    """Pure-JAX reference with matching precision (bf16 first matmul, f32 acc)."""
    h = jnp.maximum(
        jnp.dot(state.astype(jnp.bfloat16), w1.astype(jnp.bfloat16),
                preferred_element_type=jnp.float32) + b1[None, :],
        0.0,
    )
    return jnp.sum(h * w2.reshape(1, -1), axis=-1) + b2[0]


if __name__ == "__main__":
    key = jax.random.PRNGKey(0)
    k_state, k_params = jax.random.split(key)

    w1, b1, w2, b2 = init_params(k_params)
    params = prepare_critic_params(w1, b1, w2, b2)   # one-time, outside the jitted forward

    # Small batch, deliberately NOT a multiple of 128 to exercise the ragged-tile path.
    B = 10
    state = jax.random.normal(k_state, (B, IN_DIM), dtype=jnp.float32)

    value = critic_forward(state, *params)
    jax.block_until_ready(value)
    ref = _reference(state, w1, b1, w2, b2)
    assert value.shape == (B,), value.shape
    assert jnp.allclose(value, ref, atol=1e-2, rtol=1e-2), (value, ref)

    # Second check: a batch large enough to take the 2-tile ("parallel" megacore) path.
    B2 = 300
    state2 = jax.random.normal(jax.random.PRNGKey(7), (B2, IN_DIM), dtype=jnp.float32)
    value2 = critic_forward(state2, *params)
    jax.block_until_ready(value2)
    ref2 = _reference(state2, w1, b1, w2, b2)
    assert value2.shape == (B2,), value2.shape
    assert jnp.allclose(value2, ref2, atol=1e-2, rtol=1e-2), (value2, ref2)

    print("KERNEL_OK")
</pallas_src>

<mosaic_0001>
module attributes {stable_mosaic.version = 11 : i64} {
  func.func @critic_kernel(%arg0: i32, %arg1: memref<128x768xf32, #tpu.memory_space<vmem>>, %arg2: memref<768x512xbf16, #tpu.memory_space<vmem>>, %arg3: memref<1x512xf32, #tpu.memory_space<vmem>>, %arg4: memref<1x512xf32, #tpu.memory_space<vmem>>, %arg5: memref<1xf32, #tpu.memory_space<smem>>, %arg6: memref<1x128xf32, #tpu.memory_space<vmem>>) attributes {dimension_semantics = [#tpu.dimension_semantics<parallel>], iteration_bounds = array<i64: 1>, scalar_prefetch = 0 : i64, scratch_operands = 0 : i64, tpu.core_type = #tpu.core_type<tc>, window_params = [{transform_indices = @transform_0, window_bounds = array<i64: 128, 768>}, {pipeline_mode = #tpu.pipeline_mode<synchronous>, transform_indices = @transform_1, window_bounds = array<i64: 768, 512>}, {pipeline_mode = #tpu.pipeline_mode<synchronous>, transform_indices = @transform_2, window_bounds = array<i64: 1, 512>}, {pipeline_mode = #tpu.pipeline_mode<synchronous>, transform_indices = @transform_3, window_bounds = array<i64: 1, 512>}, {transform_indices = @transform_4, window_bounds = array<i64: 1>}, {transform_indices = @transform_5, window_bounds = array<i64: 1, 128>}]} {
    %c0 = arith.constant 0 : index
    %c0_0 = arith.constant 0 : index
    %0 = vector.load %arg1[%c0, %c0_0] : memref<128x768xf32, #tpu.memory_space<vmem>>, vector<128x768xf32>
    %1 = arith.truncf %0 : vector<128x768xf32> to vector<128x768xbf16>
    %c0_1 = arith.constant 0 : index
    %c0_2 = arith.constant 0 : index
    %2 = vector.load %arg2[%c0_1, %c0_2] : memref<768x512xbf16, #tpu.memory_space<vmem>>, vector<768x512xbf16>
    %cst = arith.constant dense<0.000000e+00> : vector<128x512xf32>
    %3 = tpu.matmul %1, %2, %cst {dimension_numbers = #tpu.dot_dimension_numbers<[1], [0], [0], [1], [0, 0, 1, 1], [], []>} : vector<128x768xbf16>, vector<768x512xbf16>, vector<128x512xf32> -> vector<128x512xf32>
    %c0_3 = arith.constant 0 : index
    %c0_4 = arith.constant 0 : index
    %4 = vector.load %arg3[%c0_3, %c0_4] : memref<1x512xf32, #tpu.memory_space<vmem>>, vector<1x512xf32>
    %5 = vector.broadcast %4 : vector<1x512xf32> to vector<128x512xf32>
    %6 = arith.addf %3, %5 : vector<128x512xf32>
    %cst_5 = arith.constant 0.000000e+00 : f32
    %7 = vector.broadcast %cst_5 : f32 to vector<128x512xf32>
    %8 = arith.maximumf %6, %7 : vector<128x512xf32>
    %c0_6 = arith.constant 0 : index
    %c0_7 = arith.constant 0 : index
    %9 = vector.load %arg4[%c0_6, %c0_7] : memref<1x512xf32, #tpu.memory_space<vmem>>, vector<1x512xf32>
    %10 = vector.broadcast %9 : vector<1x512xf32> to vector<128x512xf32>
    %11 = arith.mulf %8, %10 : vector<128x512xf32>
    %cst_8 = arith.constant dense<0.000000e+00> : vector<128xf32>
    %12 = vector.multi_reduction <add>, %11, %cst_8 [1] : vector<128x512xf32> to vector<128xf32>
    %13 = vector.shape_cast %12 : vector<128xf32> to vector<1x128xf32>
    %c0_9 = arith.constant 0 : index
    %14 = memref.load %arg5[%c0_9] : memref<1xf32, #tpu.memory_space<smem>>
    %15 = vector.broadcast %14 : f32 to vector<1x128xf32>
    %16 = arith.addf %13, %15 : vector<1x128xf32>
    %c0_10 = arith.constant 0 : index
    %c0_11 = arith.constant 0 : index
    %17 = vector.load %arg6[%c0_10, %c0_11] : memref<1x128xf32, #tpu.memory_space<vmem>>, vector<1x128xf32>
    tpu.vector_store %arg6[%c0_10, %c0_11], %16 {strides = array<i32>} : memref<1x128xf32, #tpu.memory_space<vmem>>, vector<1x128xf32>,
    return
  }
  func.func @transform_0(%arg0: i32) -> (i32, i32) {
    %c0_i32 = arith.constant 0 : i32
    %c0_i32_0 = arith.constant 0 : i32
    return %arg0, %c0_i32 : i32, i32
  }
  func.func @transform_1(%arg0: i32) -> (i32, i32) {
    %c0_i32 = arith.constant 0 : i32
    %c0_i32_0 = arith.constant 0 : i32
    %c0_i32_1 = arith.constant 0 : i32
    return %c0_i32, %c0_i32_0 : i32, i32
  }
  func.func @transform_2(%arg0: i32) -> (i32, i32) {
    %c0_i32 = arith.constant 0 : i32
    %c0_i32_0 = arith.constant 0 : i32
    %c0_i32_1 = arith.constant 0 : i32
    return %c0_i32, %c0_i32_0 : i32, i32
  }
  func.func @transform_3(%arg0: i32) -> (i32, i32) {
    %c0_i32 = arith.constant 0 : i32
    %c0_i32_0 = arith.constant 0 : i32
    %c0_i32_1 = arith.constant 0 : i32
    return %c0_i32, %c0_i32_0 : i32, i32
  }
  func.func @transform_4(%arg0: i32) -> i32 {
    %c0_i32 = arith.constant 0 : i32
    %c0_i32_0 = arith.constant 0 : i32
    return %c0_i32 : i32
  }
  func.func @transform_5(%arg0: i32) -> (i32, i32) {
    %c0_i32 = arith.constant 0 : i32
    %c0_i32_0 = arith.constant 0 : i32
    return %c0_i32, %arg0 : i32, i32
  }
}

</mosaic_0001>

<bundles_post_ra>
// kernel: critic_forward.1
= control target key start
LH: loop header
LB: loop body
LE: loop exit
PB: predicated region body
PF: predicated region fallthrough
CT: control target
= control target key end

     0   :  { %11 = vsyncpa [#allocation4], 0  ;;  %s3701_s0 = inlined_call_operand.hbm [shape: f32[10,768], index: 0, kind: input, shape index: {}]   ;;  %s3702_s1 = inlined_call_operand.hbm [shape: bf16[768,512], index: 1, kind: input, shape index: {}]   ;;  %s3703_s2 = inlined_call_operand.vmem [shape: f32[1,512], index: 2, kind: input, shape index: {}]   ;;  %s3704_s3 = inlined_call_operand.hbm [shape: f32[1,512], index: 3, kind: input, shape index: {}]   ;;  %s3705_s4 = inlined_call_operand.<no memory space> [shape: f32[1], index: 4, kind: input, shape index: {}]   ;;  %s3706_s5 = inlined_call_operand.vmem [shape: f32[1,128], index: 5, kind: output, shape index: {}]  }
   0x1   :  { %12 = vsyncpa [#allocation6], 0 }
   0x2   :  { %17 = vsyncadd [#allocation4], 10752  ;;  %s2990_s18 = smov [#allocation5]  }
   0x3   :  { %s30_s19 = sshll.u32 %s2990_s18, 4  ;;  %s31_s19 = int_to_ptr.vmem [resolvable:$true] %s30_s19 }
   0x4   :  { %s2934_s20 = scalar_lea.vmem %s31_s19, 24576  ;;  %p2939_p1 = scmp.lt.s32.totalorder %s31_s19, %s31_s19 }
   0x5   :  { %p2935_p0 = scmp.ne.s32.totalorder %s31_s19, %s2934_s20  ;;  %p2940_p2 = scmp.lt.s32.totalorder %s2934_s20, %s2934_s20 }
   0x7   :  { %p2941_p3 = por %p2940_p2, %p2939_p1 }
   0x9   :  { %p2942_p4 = pnand %p2941_p3, %p2935_p0 }
   0xb   :  { %2945 = shalt.err (!%p2942_p4)
}
   0xc   :  { %s2991_s21 = smov 256   ;;  %s2992_s22 = smov 16  }
   0xd   :  { %36 = dma.hbm_to_vmem [thread:$0]  %s3702_s1, 24576, %s31_s19, [#allocation6], %s2991_s21, %s2991_s21, %s2992_s22  }
   0xe   :  { %s2993_s25 = smov [#allocation3]  }
   0xf   :  { %s18_s26 = sshll.u32 %s2993_s25, 4  ;;  %s19_s26 = int_to_ptr.vmem [resolvable:$true] %s18_s26 }
  0x10   :  { %s2954_s27 = scalar_lea.vmem %s19_s26, 1536  ;;  %s2958_s28 = scalar_lea.vmem %s19_s26, 12288 }
  0x11   :  { %p2955_p5 = scmp.ne.s32.totalorder %s19_s26, %s2954_s27  ;;  %p2959_p6 = scmp.lt.s32.totalorder %s19_s26, %s19_s26 }
  0x12   :  { %p2960_p7 = scmp.lt.s32.totalorder %s2958_s28, %s2954_s27 }
  0x14   :  { %p2961_p8 = por %p2960_p7, %p2959_p6 }
  0x16   :  { %p2962_p9 = pnand %p2961_p8, %p2955_p5 }
  0x18   :  { %2965 = shalt.err (!%p2962_p9)
}
  0x19   :  { %s2994_s29 = smov 768   ;;  %s2995_s30 = smov 48  }
  0x1a   :  { %24 = dma.hbm_to_vmem [thread:$0]  %s3701_s0, 1536, %s19_s26, [#allocation4], %s2994_s29, %s2994_s29, %s2995_s30  }
  0x1b   :  { %s2996_s8 = smov [#allocation7]  }
  0x1c   :  { %s45_s9 = sshll.u32 %s2996_s8, 4  ;;  %s46_s9 = int_to_ptr.vmem [resolvable:$true] %s45_s9 }
  0x1d   :  { %s2974_s1 = scalar_lea.vmem %s46_s9, 64  ;;  %p2979_p11 = scmp.lt.s32.totalorder %s46_s9, %s46_s9 }
  0x1e   :  { %p2975_p10 = scmp.ne.s32.totalorder %s46_s9, %s2974_s1  ;;  %p2980_p12 = scmp.lt.s32.totalorder %s2974_s1, %s2974_s1 }
  0x20   :  { %p2981_p13 = por %p2980_p12, %p2979_p11 }
  0x22   :  { %p2982_p0 = pnand %p2981_p13, %p2975_p10 }
  0x24   :  { %2985 = shalt.err (!%p2982_p0)
}
  0x25   :  { %48 = dma.hbm_to_vmem [thread:$0]  %s3704_s3, 64, %s46_s9, [#allocation6]  }
  0x26   :  { %2986 = dma.done.wait [#allocation4], 12288  }
  0x27   :  { %2987 = vsyncadd [#allocation4], 4294955008 }
  0x28   :  { %2988 = dma.done.wait [#allocation6], 24640  }
  0x29   :  { %2989 = vsyncadd [#allocation6], 4294942656  ;;  %v2638_v0 = vld [vmem:[#allocation5 + $0xe4] ss:$16 sps:$4 sm:$0xff]   ;;  %v2642_v2 = vld [vmem:[#allocation5 + $0xe0] ss:$16 sps:$4 sm:$0xff]  }
  0x2a   :  { %v2640_v1 = vld [vmem:[#allocation5 + $0x2e4] ss:$16 sps:$4 sm:$0xff]   ;;  %1378 = vmatprep.subr.bf16.mxu0 %v2638_v0  ;;  %v2643_v3 = vld [vmem:[#allocation5 + $0x2e0] ss:$16 sps:$4 sm:$0xff]   ;;  %v61_v46 = vld [vmem:[#allocation3 + $0x8] sm:$0xff]  ;;  %vm2331_vm0 = vcmask 130112  }
  0x2b   :  { %1491 = vmatprep.subr.bf16.mxu1 %v2640_v1  ;;  %v2644_v4 = vld [vmem:[#allocation5 + $0xc4] ss:$16 sps:$4 sm:$0xff]   ;;  %1379 = vmatpush1.bf16.msra.mxu0 %v2642_v2  ;;  %v2648_v6 = vld [vmem:[#allocation5 + $0xc0] ss:$16 sps:$4 sm:$0xff]   ;;  %v67_v47 = vld [vmem:[#allocation3 + $0x38] sm:$0xff]  ;;  %vm2338_vm1 = vcmask 195712  }
  0x2c   :  { %1492 = vmatpush1.bf16.msra.mxu1 %v2643_v3  ;;  %v2646_v5 = vld [vmem:[#allocation5 + $0x2c4] ss:$16 sps:$4 sm:$0xff]   ;;  %1380 = vmatprep.subr.bf16.mxu0 %v2644_v4  ;;  %v2649_v7 = vld [vmem:[#allocation5 + $0x2c0] ss:$16 sps:$4 sm:$0xff]   ;;  %v63_v48 = vld [vmem:[#allocation3 + $0x18] sm:$0xff]  ;;  %v3036_v53 = vpack.c.bf16 %v67_v47, %v61_v46  ;;  %vm2345_vm2 = vcmask 261312  }
  0x2d   :  { %1493 = vmatprep.subr.bf16.mxu1 %v2646_v5  ;;  %v2650_v8 = vld [vmem:[#allocation5 + $0xa4] ss:$16 sps:$4 sm:$0xff]   ;;  %v2654_v10 = vld [vmem:[#allocation5 + $0xa0] ss:$16 sps:$4 sm:$0xff]   ;;  %v69_v49 = vld [vmem:[#allocation3 + $0x48] sm:$0xff]  ;;  %vm2352_vm3 = vcmask 326912  }
  0x2e   :  { %v2652_v9 = vld [vmem:[#allocation5 + $0x2a4] ss:$16 sps:$4 sm:$0xff]   ;;  %v2655_v11 = vld [vmem:[#allocation5 + $0x2a0] ss:$16 sps:$4 sm:$0xff]   ;;  %v3038_v54 = vpack.c.bf16 %v69_v49, %v63_v48  ;;  %1410 = vmatprep.mubr.bf16.mxu0 %v3036_v53  ;;  %vm2359_vm4 = vcmask 392512   ;;  %vm2366_vm5 = vcmask 458112  }
  0x2f   :  { %1381 = vmatpush1.bf16.msra.mxu0 %v2648_v6  ;;  %v2656_v12 = vld [vmem:[#allocation5 + $0x84] ss:$16 sps:$4 sm:$0xff]   ;;  %v2660_v14 = vld [vmem:[#allocation5 + $0x80] ss:$16 sps:$4 sm:$0xff]   ;;  %vm2373_vm6 = vcmask 523712   ;;  %vm2380_vm7 = vcmask 589312  }
  0x30   :  { %1494 = vmatpush1.bf16.msra.mxu1 %v2649_v7  ;;  %1382 = vmatprep.subr.bf16.mxu0 %v2650_v8  ;;  %v2658_v13 = vld [vmem:[#allocation5 + $0x284] ss:$16 sps:$4 sm:$0xff]   ;;  %v2661_v15 = vld [vmem:[#allocation5 + $0x280] ss:$16 sps:$4 sm:$0xff]   ;;  %vm2387_vm8 = vcmask 654912   ;;  %vm2394_vm9 = vcmask 720512  }
  0x31   :  { %1495 = vmatprep.subr.bf16.mxu1 %v2652_v9  ;;  %v2662_v16 = vld [vmem:[#allocation5 + $0x64] ss:$16 sps:$4 sm:$0xff]   ;;  %v2666_v18 = vld [vmem:[#allocation5 + $0x60] ss:$16 sps:$4 sm:$0xff]   ;;  %1523 = vmatprep.mubr.bf16.mxu1 %v3038_v54  ;;  %vm2401_vm10 = vcmask 786112   ;;  %vm2408_vm11 = vcmask 851712  }
  0x32   :  { %v2664_v17 = vld [vmem:[#allocation5 + $0x264] ss:$16 sps:$4 sm:$0xff]   ;;  %v2667_v19 = vld [vmem:[#allocation5 + $0x260] ss:$16 sps:$4 sm:$0xff]   ;;  %vm2415_vm12 = vcmask 917312   ;;  %vm2422_vm13 = vcmask 982912  }
  0x33   :  { %1383 = vmatpush1.bf16.msra.mxu0 %v2654_v10  ;;  %v2668_v20 = vld [vmem:[#allocation5 + $0x44] ss:$16 sps:$4 sm:$0xff]   ;;  %v2672_v22 = vld [vmem:[#allocation5 + $0x40] ss:$16 sps:$4 sm:$0xff]   ;;  %vm2429_vm14 = vcmask 1048512  }
  0x34   :  { %1496 = vmatpush1.bf16.msra.mxu1 %v2655_v11  ;;  %1384 = vmatprep.subr.bf16.mxu0 %v2656_v12  ;;  %v2670_v21 = vld [vmem:[#allocation5 + $0x244] ss:$16 sps:$4 sm:$0xff]   ;;  %v2673_v23 = vld [vmem:[#allocation5 + $0x240] ss:$16 sps:$4 sm:$0xff]   ;;  %v2739_v11 = vld [vmem:[#allocation5 + $0xec] ss:$16 sps:$4 sm:$0xff]  }
  0x35   :  { %1497 = vmatprep.subr.bf16.mxu1 %v2658_v13  ;;  %v2674_v24 = vld [vmem:[#allocation5 + $0x24] ss:$16 sps:$4 sm:$0xff]   ;;  %v2678_v26 = vld [vmem:[#allocation5 + $0x20] ss:$16 sps:$4 sm:$0xff]   ;;  %v2737_v13 = vld [vmem:[#allocation5 + $0xe8] ss:$16 sps:$4 sm:$0xff]  }
  0x36   :  { %v2676_v25 = vld [vmem:[#allocation5 + $0x224] ss:$16 sps:$4 sm:$0xff]   ;;  %v2679_v27 = vld [vmem:[#allocation5 + $0x220] ss:$16 sps:$4 sm:$0xff]  }
  0x37   :  { %1385 = vmatpush1.bf16.msra.mxu0 %v2660_v14  ;;  %v2680_v28 = vld [vmem:[#allocation5 + $0x4] ss:$16 sps:$4 sm:$0xff]   ;;  %v2684_v30 = vld [vmem:[#allocation5] ss:$16 sps:$4 sm:$0xff]   ;;  %v73_v14 = vld [vmem:[#allocation3 + $0x68] sm:$0xff] }
  0x38   :  { %1498 = vmatpush1.bf16.msra.mxu1 %v2661_v15  ;;  %1386 = vmatprep.subr.bf16.mxu0 %v2662_v16  ;;  %v2682_v29 = vld [vmem:[#allocation5 + $0x204] ss:$16 sps:$4 sm:$0xff]   ;;  %v2685_v31 = vld [vmem:[#allocation5 + $0x200] ss:$16 sps:$4 sm:$0xff]   ;;  %v79_v15 = vld [vmem:[#allocation3 + $0x98] sm:$0xff] }
  0x39   :  { %1499 = vmatprep.subr.bf16.mxu1 %v2664_v17  ;;  %v2686_v32 = vld [vmem:[#allocation5 + $0x1e4] ss:$16 sps:$4 sm:$0xff]   ;;  %v2690_v34 = vld [vmem:[#allocation5 + $0x1e0] ss:$16 sps:$4 sm:$0xff]  }
  0x3a   :  { %v2688_v33 = vld [vmem:[#allocation5 + $0x3e4] ss:$16 sps:$4 sm:$0xff]   ;;  %v2691_v35 = vld [vmem:[#allocation5 + $0x3e0] ss:$16 sps:$4 sm:$0xff]  }
  0x3b   :  { %1387 = vmatpush1.bf16.msra.mxu0 %v2666_v18  ;;  %v2692_v36 = vld [vmem:[#allocation5 + $0x1c4] ss:$16 sps:$4 sm:$0xff]   ;;  %v2696_v38 = vld [vmem:[#allocation5 + $0x1c0] ss:$16 sps:$4 sm:$0xff]   ;;  %v75_v18 = vld [vmem:[#allocation3 + $0x78] sm:$0xff] }
  0x3c   :  { %1500 = vmatpush1.bf16.msra.mxu1 %v2667_v19  ;;  %1388 = vmatprep.subr.bf16.mxu0 %v2668_v20  ;;  %v2694_v37 = vld [vmem:[#allocation5 + $0x3c4] ss:$16 sps:$4 sm:$0xff]   ;;  %v2697_v39 = vld [vmem:[#allocation5 + $0x3c0] ss:$16 sps:$4 sm:$0xff]   ;;  %v81_v19 = vld [vmem:[#allocation3 + $0xa8] sm:$0xff] }
  0x3d   :  { %1501 = vmatprep.subr.bf16.mxu1 %v2670_v21  ;;  %v2698_v40 = vld [vmem:[#allocation5 + $0x1a4] ss:$16 sps:$4 sm:$0xff]   ;;  %v2702_v42 = vld [vmem:[#allocation5 + $0x1a0] ss:$16 sps:$4 sm:$0xff]   ;;  %v2745_v21 = vld [vmem:[#allocation5 + $0xcc] ss:$16 sps:$4 sm:$0xff]  }
  0x3e   :  { %v2700_v41 = vld [vmem:[#allocation5 + $0x3a4] ss:$16 sps:$4 sm:$0xff]   ;;  %v2703_v43 = vld [vmem:[#allocation5 + $0x3a0] ss:$16 sps:$4 sm:$0xff]  }
  0x3f   :  { %1389 = vmatpush1.bf16.msra.mxu0 %v2672_v22  ;;  %v2704_v44 = vld [vmem:[#allocation5 + $0x184] ss:$16 sps:$4 sm:$0xff]   ;;  %v2708_v50 = vld [vmem:[#allocation5 + $0x180] ss:$16 sps:$4 sm:$0xff]  }
  0x40   :  { %1502 = vmatpush1.bf16.msra.mxu1 %v2673_v23  ;;  %1390 = vmatprep.subr.bf16.mxu0 %v2674_v24  ;;  %v2706_v45 = vld [vmem:[#allocation5 + $0x384] ss:$16 sps:$4 sm:$0xff]   ;;  %v2709_v51 = vld [vmem:[#allocation5 + $0x380] ss:$16 sps:$4 sm:$0xff]   ;;  %v3046_v23 = vpack.c.bf16 %v79_v15, %v73_v14  ;;  %v3048_v24 = vpack.c.bf16 %v81_v19, %v75_v18  ;;  %v111_v18 = vld [vmem:[#allocation3 + $0x198] sm:$0xff] }
  0x41   :  { %1503 = vmatprep.subr.bf16.mxu1 %v2676_v25  ;;  %v2710_v52 = vld [vmem:[#allocation5 + $0x164] ss:$16 sps:$4 sm:$0xff]   ;;  %v2714_v56 = vld [vmem:[#allocation5 + $0x160] ss:$16 sps:$4 sm:$0xff]   ;;  %v2743_v25 = vld [vmem:[#allocation5 + $0xc8] ss:$16 sps:$4 sm:$0xff]  }
  0x42   :  { %v2712_v55 = vld [vmem:[#allocation5 + $0x364] ss:$16 sps:$4 sm:$0xff]   ;;  %v2715_v57 = vld [vmem:[#allocation5 + $0x360] ss:$16 sps:$4 sm:$0xff]   ;;  %v117_v19 = vld [vmem:[#allocation3 + $0x1c8] sm:$0xff] }
  0x43   :  { %1391 = vmatpush1.bf16.msra.mxu0 %v2678_v26  ;;  %v2716_v58 = vld [vmem:[#allocation5 + $0x144] ss:$16 sps:$4 sm:$0xff]   ;;  %v2720_v60 = vld [vmem:[#allocation5 + $0x140] ss:$16 sps:$4 sm:$0xff]  }
  0x44   :  { %1504 = vmatpush1.bf16.msra.mxu1 %v2679_v27  ;;  %1392 = vmatprep.subr.bf16.mxu0 %v2680_v28  ;;  %v2718_v59 = vld [vmem:[#allocation5 + $0x344] ss:$16 sps:$4 sm:$0xff]   ;;  %v2721_v61 = vld [vmem:[#allocation5 + $0x340] ss:$16 sps:$4 sm:$0xff]  }
  0x45   :  { %1505 = vmatprep.subr.bf16.mxu1 %v2682_v29  ;;  %v2722_v62 = vld [vmem:[#allocation5 + $0x124] ss:$16 sps:$4 sm:$0xff]   ;;  %v2726_v0 = vld [vmem:[#allocation5 + $0x120] ss:$16 sps:$4 sm:$0xff]  }
  0x46   :  { %v2724_v63 = vld [vmem:[#allocation5 + $0x324] ss:$16 sps:$4 sm:$0xff]   ;;  %v2727_v1 = vld [vmem:[#allocation5 + $0x320] ss:$16 sps:$4 sm:$0xff]  }
  0x47   :  { %1393 = vmatpush1.bf16.msra.mxu0 %v2684_v30  ;;  %v2728_v2 = vld [vmem:[#allocation5 + $0x104] ss:$16 sps:$4 sm:$0xff]   ;;  %v2732_v4 = vld [vmem:[#allocation5 + $0x100] ss:$16 sps:$4 sm:$0xff]  }
  0x48   :  { %1506 = vmatpush1.bf16.msra.mxu1 %v2685_v31  ;;  %1394 = vmatprep.subr.bf16.mxu0 %v2686_v32  ;;  %v2730_v3 = vld [vmem:[#allocation5 + $0x304] ss:$16 sps:$4 sm:$0xff]   ;;  %v2733_v5 = vld [vmem:[#allocation5 + $0x300] ss:$16 sps:$4 sm:$0xff]   ;;  %v2751_v31 = vld [vmem:[#allocation5 + $0xac] ss:$16 sps:$4 sm:$0xff]  }
  0x49   :  { %1507 = vmatprep.subr.bf16.mxu1 %v2688_v33  ;;  %v60_v6 = vld [vmem:[#allocation3] sm:$0xff]  ;;  %v66_v7 = vld [vmem:[#allocation3 + $0x30] sm:$0xff]  ;;  %v2749_v33 = vld [vmem:[#allocation5 + $0xa8] ss:$16 sps:$4 sm:$0xff]  }
  0x4a   :  { %v62_v8 = vld [vmem:[#allocation3 + $0x10] sm:$0xff]  ;;  %v68_v9 = vld [vmem:[#allocation3 + $0x40] sm:$0xff]  ;;  %v3042_v16 = vpack.c.bf16 %v66_v7, %v60_v6 }
  0x4b   :  { %1395 = vmatpush2.bf16.msra.mxu0 %v2690_v34  ;;  %v2736_v10 = vld [vmem:[#allocation5 + $0x4e4] ss:$16 sps:$4 sm:$0xff]   ;;  %v2734_v12 = vld [vmem:[#allocation5 + $0x4e0] ss:$16 sps:$4 sm:$0xff]   ;;  %v3044_v17 = vpack.c.bf16 %v68_v9, %v62_v8  ;;  %v85_v34 = vld [vmem:[#allocation3 + $0xc8] sm:$0xff] }
  0x4c   :  { %1508 = vmatpush2.bf16.msra.mxu1 %v2691_v35  ;;  %1396 = vmatprep.subr.bf16.mxu0 %v2692_v36  ;;  %v2742_v20 = vld [vmem:[#allocation5 + $0x4c4] ss:$16 sps:$4 sm:$0xff]   ;;  %v2740_v22 = vld [vmem:[#allocation5 + $0x4c0] ss:$16 sps:$4 sm:$0xff]   ;;  %v91_v35 = vld [vmem:[#allocation3 + $0xf8] sm:$0xff] }
  0x4d   :  { %1509 = vmatprep.subr.bf16.mxu1 %v2694_v37  ;;  %v72_v26 = vld [vmem:[#allocation3 + $0x60] sm:$0xff]  ;;  %v78_v27 = vld [vmem:[#allocation3 + $0x90] sm:$0xff]  ;;  %v2775_v9 = vld [vmem:[#allocation5 + $0x2c] ss:$16 sps:$4 sm:$0xff]  }
  0x4e   :  { %v74_v28 = vld [vmem:[#allocation3 + $0x70] sm:$0xff]  ;;  %v80_v29 = vld [vmem:[#allocation3 + $0xa0] sm:$0xff]  ;;  %v3054_v36 = vpack.c.bf16 %v78_v27, %v72_v26  ;;  %v3084_v26 = vpack.c.bf16 %v117_v19, %v111_v18  ;;  %v2779_v27 = vld [vmem:[#allocation5 + $0x8] ss:$16 sps:$4 sm:$0xff]  }
  0x4f   :  { %1397 = vmatpush2.bf16.msra.mxu0 %v2696_v38  ;;  %v2748_v30 = vld [vmem:[#allocation5 + $0x4a4] ss:$16 sps:$4 sm:$0xff]   ;;  %v2746_v32 = vld [vmem:[#allocation5 + $0x4a0] ss:$16 sps:$4 sm:$0xff]   ;;  %v3056_v37 = vpack.c.bf16 %v80_v29, %v74_v28  ;;  %v87_v38 = vld [vmem:[#allocation3 + $0xd8] sm:$0xff] }
  0x50   :  { %1510 = vmatpush2.bf16.msra.mxu1 %v2697_v39  ;;  %1398 = vmatprep.subr.bf16.mxu0 %v2698_v40  ;;  %v93_v39 = vld [vmem:[#allocation3 + $0x108] sm:$0xff]  ;;  %v2754_v40 = vld [vmem:[#allocation5 + $0x484] ss:$16 sps:$4 sm:$0xff]  }
  0x51   :  { %1511 = vmatprep.subr.bf16.mxu1 %v2700_v41  ;;  %v2757_v41 = vld [vmem:[#allocation5 + $0x8c] ss:$16 sps:$4 sm:$0xff]   ;;  %v84_v46 = vld [vmem:[#allocation3 + $0xc0] sm:$0xff]  ;;  %v90_v47 = vld [vmem:[#allocation3 + $0xf0] sm:$0xff] }
  0x52   :  { %v86_v48 = vld [vmem:[#allocation3 + $0xd0] sm:$0xff]  ;;  %v92_v49 = vld [vmem:[#allocation3 + $0x100] sm:$0xff] }
  0x53   :  { %1399 = vmatpush2.bf16.msra.mxu0 %v2702_v42  ;;  %v2752_v42 = vld [vmem:[#allocation5 + $0x480] ss:$16 sps:$4 sm:$0xff]   ;;  %v2772_v8 = vld [vmem:[#allocation5 + $0x424] ss:$16 sps:$4 sm:$0xff]  }
  0x54   :  { %1512 = vmatpush2.bf16.msra.mxu1 %v2703_v43  ;;  %1400 = vmatprep.subr.bf16.mxu0 %v2704_v44  ;;  %v3058_v43 = vpack.c.bf16 %v91_v35, %v85_v34  ;;  %v3060_v44 = vpack.c.bf16 %v93_v39, %v87_v38  ;;  %v98_v6 = vld [vmem:[#allocation3 + $0x130] sm:$0xff]  ;;  %v104_v7 = vld [vmem:[#allocation3 + $0x160] sm:$0xff]  ;;  %v2785_v35 = vld [vmem:[#allocation5 + $0x1e8] ss:$16 sps:$4 sm:$0xff]  }
  0x55   :  { %1513 = vmatprep.subr.bf16.mxu1 %v2706_v45  ;;  %v2755_v45 = vld [vmem:[#allocation5 + $0x88] ss:$16 sps:$4 sm:$0xff]   ;;  %v3080_v15 = vpack.c.bf16 %v104_v7, %v98_v6  ;;  %v108_v28 = vld [vmem:[#allocation3 + $0x180] sm:$0xff]  ;;  %v114_v29 = vld [vmem:[#allocation3 + $0x1b0] sm:$0xff] }
  0x56   :  { %v2782_v34 = vld [vmem:[#allocation5 + $0x5e0] ss:$16 sps:$4 sm:$0xff]   ;;  %v121_v38 = vld [vmem:[#allocation3 + $0x1e8] sm:$0xff]  ;;  %v127_v39 = vld [vmem:[#allocation3 + $0x218] sm:$0xff] }
  0x57   :  { %1401 = vmatpush2.bf16.msra.mxu0 %v2708_v50  ;;  %v2760_v50 = vld [vmem:[#allocation5 + $0x464] ss:$16 sps:$4 sm:$0xff]   ;;  %v135_v6 = vld [vmem:[#allocation3 + $0x258] sm:$0xff]  ;;  %v141_v7 = vld [vmem:[#allocation3 + $0x288] sm:$0xff] }
  0x58   :  { %1514 = vmatpush2.bf16.msra.mxu1 %v2709_v51  ;;  %1402 = vmatprep.subr.bf16.mxu0 %v2710_v52  ;;  %v2763_v51 = vld [vmem:[#allocation5 + $0x6c] ss:$16 sps:$4 sm:$0xff]   ;;  %v2758_v52 = vld [vmem:[#allocation5 + $0x460] ss:$16 sps:$4 sm:$0xff]  }
  0x59   :  { %1515 = vmatprep.subr.bf16.mxu1 %v2712_v55  ;;  %v2761_v55 = vld [vmem:[#allocation5 + $0x68] ss:$16 sps:$4 sm:$0xff]   ;;  %v132_v18 = vld [vmem:[#allocation3 + $0x240] sm:$0xff]  ;;  %v138_v19 = vld [vmem:[#allocation3 + $0x270] sm:$0xff] }
  0x5b   :  { %1403 = vmatpush2.bf16.msra.mxu0 %v2714_v56  ;;  %v97_v56 = vld [vmem:[#allocation3 + $0x128] sm:$0xff] }
  0x5c   :  { %1516 = vmatpush2.bf16.msra.mxu1 %v2715_v57  ;;  %1404 = vmatprep.subr.bf16.mxu0 %v2716_v58  ;;  %v103_v57 = vld [vmem:[#allocation3 + $0x158] sm:$0xff]  ;;  %v3066_v58 = vpack.c.bf16 %v90_v47, %v84_v46  ;;  %v2790_v46 = vld [vmem:[#allocation5 + $0x5c4] ss:$16 sps:$4 sm:$0xff]  }
  0x5d   :  { %1517 = vmatprep.subr.bf16.mxu1 %v2718_v59  ;;  %v3068_v59 = vpack.c.bf16 %v92_v49, %v86_v48  ;;  %v2793_v47 = vld [vmem:[#allocation5 + $0x1cc] ss:$16 sps:$4 sm:$0xff]   ;;  %v2788_v48 = vld [vmem:[#allocation5 + $0x5c0] ss:$16 sps:$4 sm:$0xff]   ;;  %v3094_v49 = vpack.c.bf16 %v127_v39, %v121_v38  ;;  %v2814_v38 = vld [vmem:[#allocation5 + $0x544] ss:$16 sps:$4 sm:$0xff]  }
  0x5e   :  { %v2817_v39 = vld [vmem:[#allocation5 + $0x14c] ss:$16 sps:$4 sm:$0xff]  }
  0x5f   :  { %1405 = vmatpush2.bf16.msra.mxu0 %v2720_v60  ;;  %v99_v60 = vld [vmem:[#allocation3 + $0x138] sm:$0xff] }
  0x60   :  { %1518 = vmatpush2.bf16.msra.mxu1 %v2721_v61  ;;  %1406 = vmatprep.subr.bf16.mxu0 %v2722_v62  ;;  %v105_v61 = vld [vmem:[#allocation3 + $0x168] sm:$0xff]  ;;  %v2766_v62 = vld [vmem:[#allocation5 + $0x444] ss:$16 sps:$4 sm:$0xff]  }
  0x61   :  { %1519 = vmatprep.subr.bf16.mxu1 %v2724_v63  ;;  %v2769_v63 = vld [vmem:[#allocation5 + $0x4c] ss:$16 sps:$4 sm:$0xff]  }
  0x63   :  { %1407 = vmatpush2.bf16.msra.mxu0 %v2726_v0  ;;  %v2764_v0 = vld [vmem:[#allocation5 + $0x440] ss:$16 sps:$4 sm:$0xff]  }
  0x64   :  { %1520 = vmatpush2.bf16.msra.mxu1 %v2727_v1  ;;  %1408 = vmatprep.subr.bf16.mxu0 %v2728_v2  ;;  %v3070_v1 = vpack.c.bf16 %v103_v57, %v97_v56  ;;  %v3072_v2 = vpack.c.bf16 %v105_v61, %v99_v60  ;;  %v122_v56 = vld [vmem:[#allocation3 + $0x1f0] sm:$0xff]  ;;  %v128_v57 = vld [vmem:[#allocation3 + $0x220] sm:$0xff]  ;;  %v2799_v61 = vld [vmem:[#allocation5 + $0x1ac] ss:$16 sps:$4 sm:$0xff]  }
  0x65   :  { %1521 = vmatprep.subr.bf16.mxu1 %v2730_v3  ;;  %v2767_v3 = vld [vmem:[#allocation5 + $0x48] ss:$16 sps:$4 sm:$0xff]   ;;  %v2796_v60 = vld [vmem:[#allocation5 + $0x5a4] ss:$16 sps:$4 sm:$0xff]  }
  0x67   :  { %1409 = vmatpush2.bf16.msra.mxu0 %v2732_v4  ;;  %v96_v4 = vld [vmem:[#allocation3 + $0x120] sm:$0xff] }
  0x68   :  { %1522 = vmatpush2.bf16.msra.mxu1 %v2733_v5  ;;  %1604 = vmatprep.subr.bf16.mxu0 %v2736_v10  ;;  %v102_v5 = vld [vmem:[#allocation3 + $0x150] sm:$0xff] }
  0x69   :  { %1717 = vmatprep.subr.bf16.mxu1 %v2739_v11  ;;  %v2770_v10 = vld [vmem:[#allocation5 + $0x420] ss:$16 sps:$4 sm:$0xff]   ;;  %v2773_v11 = vld [vmem:[#allocation5 + $0x28] ss:$16 sps:$4 sm:$0xff]   ;;  %v3078_v14 = vpack.c.bf16 %v102_v5, %v96_v4  ;;  %v3104_v5 = vpack.c.bf16 %v128_v57, %v122_v56  ;;  %v2820_v56 = vld [vmem:[#allocation5 + $0x524] ss:$16 sps:$4 sm:$0xff]  }
  0x6a   :  { %1411 = vmatmul.mubr.bf16.vlgmr.msra.gmra.mxu0 %v3042_v16  ;;  %v2823_v57 = vld [vmem:[#allocation5 + $0x12c] ss:$16 sps:$4 sm:$0xff]  }
  0x6b   :  { %1524 = vmatmul.mubr.bf16.vlgmr.msra.gmra.mxu1 %v3044_v17  ;;  %1605 = vmatpush1.bf16.msra.mxu0 %v2734_v12  ;;  %v109_v12 = vld [vmem:[#allocation3 + $0x188] sm:$0xff] }
  0x6c   :  { %1718 = vmatpush1.bf16.msra.mxu1 %v2737_v13  ;;  %1606 = vmatprep.subr.bf16.mxu0 %v2742_v20  ;;  %v115_v13 = vld [vmem:[#allocation3 + $0x1b8] sm:$0xff]  ;;  %v2778_v20 = vld [vmem:[#allocation5 + $0x404] ss:$16 sps:$4 sm:$0xff]  }
  0x6d   :  { %1719 = vmatprep.subr.bf16.mxu1 %v2745_v21  ;;  %1420 = vmatprep.mubr.bf16.mxu0 %v3046_v23  ;;  %v2781_v21 = vld [vmem:[#allocation5 + $0xc] ss:$16 sps:$4 sm:$0xff]  }
  0x6e   :  { %1533 = vmatprep.mubr.bf16.mxu1 %v3048_v24 }
  0x6f   :  { %1607 = vmatpush1.bf16.msra.mxu0 %v2740_v22  ;;  %v2776_v22 = vld [vmem:[#allocation5 + $0x400] ss:$16 sps:$4 sm:$0xff]  }
  0x70   :  { %1720 = vmatpush1.bf16.msra.mxu1 %v2743_v25  ;;  %1608 = vmatprep.subr.bf16.mxu0 %v2748_v30  ;;  %v3082_v25 = vpack.c.bf16 %v115_v13, %v109_v12  ;;  %v110_v30 = vld [vmem:[#allocation3 + $0x190] sm:$0xff]  ;;  %v3108_v13 = vpack.c.bf16 %v141_v7, %v135_v6  ;;  %v2829_v7 = vld [vmem:[#allocation5 + $0x10c] ss:$16 sps:$4 sm:$0xff]  }
  0x71   :  { %1721 = vmatprep.subr.bf16.mxu1 %v2751_v31  ;;  %v116_v31 = vld [vmem:[#allocation3 + $0x1c0] sm:$0xff] }
  0x72   :  { %1421 = vmatmul.mubr.bf16.gmra.mxu0 %v3054_v36  ;;  %v2826_v6 = vld [vmem:[#allocation5 + $0x504] ss:$16 sps:$4 sm:$0xff]  }
  0x73   :  { %1534 = vmatmul.mubr.bf16.gmra.mxu1 %v3056_v37  ;;  %1609 = vmatpush1.bf16.msra.mxu0 %v2746_v32  ;;  %v2784_v32 = vld [vmem:[#allocation5 + $0x5e4] ss:$16 sps:$4 sm:$0xff]  }
  0x74   :  { %1722 = vmatpush1.bf16.msra.mxu1 %v2749_v33  ;;  %1610 = vmatprep.subr.bf16.mxu0 %v2754_v40  ;;  %v2787_v33 = vld [vmem:[#allocation5 + $0x1ec] ss:$16 sps:$4 sm:$0xff]   ;;  %v3090_v40 = vpack.c.bf16 %v114_v29, %v108_v28  ;;  %v2806_v28 = vld [vmem:[#allocation5 + $0x560] ss:$16 sps:$4 sm:$0xff]  }
  0x75   :  { %1723 = vmatprep.subr.bf16.mxu1 %v2757_v41  ;;  %1430 = vmatprep.mubr.bf16.mxu0 %v3058_v43  ;;  %v3092_v41 = vpack.c.bf16 %v116_v31, %v110_v30  ;;  %v145_v29 = vld [vmem:[#allocation3 + $0x2a8] sm:$0xff]  ;;  %v151_v30 = vld [vmem:[#allocation3 + $0x2d8] sm:$0xff]  ;;  %v3114_v31 = vpack.c.bf16 %v138_v19, %v132_v18  ;;  %v70_v18 = vld [vmem:[#allocation3 + $0x50] sm:$0xff] }
  0x76   :  { %1543 = vmatprep.mubr.bf16.mxu1 %v3060_v44  ;;  %v2832_v19 = vld [vmem:[#allocation5 + $0x2ec] ss:$16 sps:$4 sm:$0xff]  }
  0x77   :  { %1611 = vmatpush1.bf16.msra.mxu0 %v2752_v42  ;;  %v123_v42 = vld [vmem:[#allocation3 + $0x1f8] sm:$0xff] }
  0x78   :  { %1724 = vmatpush1.bf16.msra.mxu1 %v2755_v45  ;;  %1612 = vmatprep.subr.bf16.mxu0 %v2760_v50  ;;  %v129_v45 = vld [vmem:[#allocation3 + $0x228] sm:$0xff] }
  0x79   :  { %1725 = vmatprep.subr.bf16.mxu1 %v2763_v51  ;;  %v3096_v50 = vpack.c.bf16 %v129_v45, %v123_v42  ;;  %v2791_v51 = vld [vmem:[#allocation5 + $0x1c8] ss:$16 sps:$4 sm:$0xff]   ;;  %v2812_v42 = vld [vmem:[#allocation5 + $0x540] ss:$16 sps:$4 sm:$0xff]  }
  0x7a   :  { %1431 = vmatmul.mubr.bf16.gmra.mxu0 %v3066_v58  ;;  %v2815_v45 = vld [vmem:[#allocation5 + $0x148] ss:$16 sps:$4 sm:$0xff]  }
  0x7b   :  { %1544 = vmatmul.mubr.bf16.gmra.mxu1 %v3068_v59  ;;  %1613 = vmatpush1.bf16.msra.mxu0 %v2758_v52  ;;  %v120_v52 = vld [vmem:[#allocation3 + $0x1e0] sm:$0xff] }
  0x7c   :  { %1726 = vmatpush1.bf16.msra.mxu1 %v2761_v55  ;;  %1614 = vmatprep.subr.bf16.mxu0 %v2766_v62  ;;  %v126_v55 = vld [vmem:[#allocation3 + $0x210] sm:$0xff] }
  0x7d   :  { %1727 = vmatprep.subr.bf16.mxu1 %v2769_v63  ;;  %1440 = vmatprep.mubr.bf16.mxu0 %v3070_v1  ;;  %v2794_v62 = vld [vmem:[#allocation5 + $0x5a0] ss:$16 sps:$4 sm:$0xff]   ;;  %v2797_v63 = vld [vmem:[#allocation5 + $0x1a8] ss:$16 sps:$4 sm:$0xff]   ;;  %v3102_v4 = vpack.c.bf16 %v126_v55, %v120_v52 }
  0x7e   :  { %1553 = vmatprep.mubr.bf16.mxu1 %v3072_v2  ;;  %v146_v52 = vld [vmem:[#allocation3 + $0x2b0] sm:$0xff]  ;;  %v152_v55 = vld [vmem:[#allocation3 + $0x2e0] sm:$0xff] }
  0x7f   :  { %1615 = vmatpush1.bf16.msra.mxu0 %v2764_v0  ;;  %v133_v0 = vld [vmem:[#allocation3 + $0x248] sm:$0xff] }
  0x80   :  { %1728 = vmatpush1.bf16.msra.mxu1 %v2767_v3  ;;  %1616 = vmatprep.subr.bf16.mxu0 %v2772_v8  ;;  %v139_v3 = vld [vmem:[#allocation3 + $0x278] sm:$0xff]  ;;  %v2802_v8 = vld [vmem:[#allocation5 + $0x584] ss:$16 sps:$4 sm:$0xff]  }
  0x81   :  { %1729 = vmatprep.subr.bf16.mxu1 %v2775_v9  ;;  %v2805_v9 = vld [vmem:[#allocation5 + $0x18c] ss:$16 sps:$4 sm:$0xff]   ;;  %v3106_v12 = vpack.c.bf16 %v139_v3, %v133_v0  ;;  %v2818_v0 = vld [vmem:[#allocation5 + $0x520] ss:$16 sps:$4 sm:$0xff]   ;;  %v2821_v3 = vld [vmem:[#allocation5 + $0x128] ss:$16 sps:$4 sm:$0xff]  }
  0x82   :  { %1441 = vmatmul.mubr.bf16.gmra.mxu0 %v3078_v14 }
  0x83   :  { %1554 = vmatmul.mubr.bf16.gmra.mxu1 %v3080_v15  ;;  %1617 = vmatpush1.bf16.msra.mxu0 %v2770_v10  ;;  %v2800_v10 = vld [vmem:[#allocation5 + $0x580] ss:$16 sps:$4 sm:$0xff]  }
  0x84   :  { %1730 = vmatpush1.bf16.msra.mxu1 %v2773_v11  ;;  %1618 = vmatprep.subr.bf16.mxu0 %v2778_v20  ;;  %v2803_v11 = vld [vmem:[#allocation5 + $0x188] ss:$16 sps:$4 sm:$0xff]   ;;  %v134_v20 = vld [vmem:[#allocation3 + $0x250] sm:$0xff] }
  0x85   :  { %1731 = vmatprep.subr.bf16.mxu1 %v2781_v21  ;;  %1450 = vmatprep.mubr.bf16.mxu0 %v3082_v25  ;;  %v140_v21 = vld [vmem:[#allocation3 + $0x280] sm:$0xff] }
  0x86   :  { %1563 = vmatprep.mubr.bf16.mxu1 %v3084_v26 }
  0x87   :  { %1619 = vmatpush1.bf16.msra.mxu0 %v2776_v22  ;;  %v2808_v22 = vld [vmem:[#allocation5 + $0x564] ss:$16 sps:$4 sm:$0xff]  }
  0x88   :  { %1732 = vmatpush1.bf16.msra.mxu1 %v2779_v27  ;;  %1620 = vmatprep.subr.bf16.mxu0 %v2784_v32  ;;  %v2811_v27 = vld [vmem:[#allocation5 + $0x16c] ss:$16 sps:$4 sm:$0xff]   ;;  %v3116_v32 = vpack.c.bf16 %v140_v21, %v134_v20  ;;  %v2830_v21 = vld [vmem:[#allocation5 + $0x2e8] ss:$16 sps:$4 sm:$0xff]  }
  0x89   :  { %1733 = vmatprep.subr.bf16.mxu1 %v2787_v33  ;;  %v147_v33 = vld [vmem:[#allocation3 + $0x2b8] sm:$0xff] }
  0x8a   :  { %1451 = vmatmul.mubr.bf16.gmra.mxu0 %v3090_v40  ;;  %v2835_v20 = vld [vmem:[#allocation5 + $0x4ec] ss:$16 sps:$4 sm:$0xff]  }
  0x8b   :  { %1564 = vmatmul.mubr.bf16.gmra.mxu1 %v3092_v41  ;;  %1621 = vmatpush2.bf16.msra.mxu0 %v2782_v34  ;;  %v153_v34 = vld [vmem:[#allocation3 + $0x2e8] sm:$0xff] }
  0x8c   :  { %1734 = vmatpush2.bf16.msra.mxu1 %v2785_v35  ;;  %1622 = vmatprep.subr.bf16.mxu0 %v2790_v46  ;;  %v2809_v35 = vld [vmem:[#allocation5 + $0x168] ss:$16 sps:$4 sm:$0xff]   ;;  %v3118_v46 = vpack.c.bf16 %v151_v30, %v145_v29  ;;  %v2838_v30 = vld [vmem:[#allocation5 + $0x2cc] ss:$16 sps:$4 sm:$0xff]  }
  0x8d   :  { %1735 = vmatprep.subr.bf16.mxu1 %v2793_v47  ;;  %1460 = vmatprep.mubr.bf16.mxu0 %v3094_v49  ;;  %v3120_v47 = vpack.c.bf16 %v153_v34, %v147_v33  ;;  %v83_v29 = vld [vmem:[#allocation3 + $0xb8] sm:$0xff] }
  0x8e   :  { %1573 = vmatprep.mubr.bf16.mxu1 %v3096_v50  ;;  %v2841_v33 = vld [vmem:[#allocation5 + $0x4cc] ss:$16 sps:$4 sm:$0xff]   ;;  %v2836_v34 = vld [vmem:[#allocation5 + $0x2c8] ss:$16 sps:$4 sm:$0xff]  }
  0x8f   :  { %1623 = vmatpush2.bf16.msra.mxu0 %v2788_v48  ;;  %v144_v48 = vld [vmem:[#allocation3 + $0x2a0] sm:$0xff] }
  0x90   :  { %1736 = vmatpush2.bf16.msra.mxu1 %v2791_v51  ;;  %1624 = vmatprep.subr.bf16.mxu0 %v2796_v60  ;;  %v150_v51 = vld [vmem:[#allocation3 + $0x2d0] sm:$0xff] }
  0x91   :  { %1737 = vmatprep.subr.bf16.mxu1 %v2799_v61  ;;  %v3126_v60 = vpack.c.bf16 %v150_v51, %v144_v48  ;;  %v3128_v61 = vpack.c.bf16 %v152_v55, %v146_v52  ;;  %v2842_v48 = vld [vmem:[#allocation5 + $0x2a8] ss:$16 sps:$4 sm:$0xff]  }
  0x92   :  { %1461 = vmatmul.mubr.bf16.gmra.mxu0 %v3102_v4  ;;  %v2845_v51 = vld [vmem:[#allocation5 + $0x4a8] ss:$16 sps:$4 sm:$0xff]  }
  0x93   :  { %1574 = vmatmul.mubr.bf16.gmra.mxu1 %v3104_v5  ;;  %1625 = vmatpush2.bf16.msra.mxu0 %v2794_v62  ;;  %v65_v62 = vld [vmem:[#allocation3 + $0x28] sm:$0xff] }
  0x94   :  { %1738 = vmatpush2.bf16.msra.mxu1 %v2797_v63  ;;  %1626 = vmatprep.subr.bf16.mxu0 %v2802_v8  ;;  %v71_v63 = vld [vmem:[#allocation3 + $0x58] sm:$0xff]  ;;  %v2824_v8 = vld [vmem:[#allocation5 + $0x500] ss:$16 sps:$4 sm:$0xff]   ;;  %v89_v55 = vld [vmem:[#allocation3 + $0xe8] sm:$0xff] }
  0x95   :  { %1739 = vmatprep.subr.bf16.mxu1 %v2805_v9  ;;  %1470 = vmatprep.mubr.bf16.mxu0 %v3106_v12  ;;  %v2827_v9 = vld [vmem:[#allocation5 + $0x108] ss:$16 sps:$4 sm:$0xff]  }
  0x96   :  { %1583 = vmatprep.mubr.bf16.mxu1 %v3108_v13 }
  0x97   :  { %1627 = vmatpush2.bf16.msra.mxu0 %v2800_v10  ;;  %v3130_v10 = vpack.c.bf16 %v71_v63, %v65_v62  ;;  %v2848_v63 = vld [vmem:[#allocation5 + $0x288] ss:$16 sps:$4 sm:$0xff]  }
  0x98   :  { %1740 = vmatpush2.bf16.msra.mxu1 %v2803_v11  ;;  %1628 = vmatprep.subr.bf16.mxu0 %v2808_v22  ;;  %v64_v11 = vld [vmem:[#allocation3 + $0x20] sm:$0xff] }
  0x99   :  { %1741 = vmatprep.subr.bf16.mxu1 %v2811_v27  ;;  %v3136_v22 = vpack.c.bf16 %v70_v18, %v64_v11  ;;  %v2833_v27 = vld [vmem:[#allocation5 + $0x4e8] ss:$16 sps:$4 sm:$0xff]  }
  0x9a   :  { %1471 = vmatmul.mubr.bf16.gmra.mxu0 %v3114_v31  ;;  %v101_v18 = vld [vmem:[#allocation3 + $0x148] sm:$0xff] }
  0x9b   :  { %1584 = vmatmul.mubr.bf16.gmra.mxu1 %v3116_v32  ;;  %1629 = vmatpush2.bf16.msra.mxu0 %v2806_v28  ;;  %v77_v28 = vld [vmem:[#allocation3 + $0x88] sm:$0xff] }
  0x9c   :  { %1742 = vmatpush2.bf16.msra.mxu1 %v2809_v35  ;;  %1630 = vmatprep.subr.bf16.mxu0 %v2814_v38  ;;  %v3138_v35 = vpack.c.bf16 %v83_v29, %v77_v28  ;;  %v76_v38 = vld [vmem:[#allocation3 + $0x80] sm:$0xff]  ;;  %v106_v29 = vld [vmem:[#allocation3 + $0x170] sm:$0xff] }
  0x9d   :  { %1743 = vmatprep.subr.bf16.mxu1 %v2817_v39  ;;  %1480 = vmatprep.mubr.bf16.mxu0 %v3118_v46  ;;  %v82_v39 = vld [vmem:[#allocation3 + $0xb0] sm:$0xff]  ;;  %v100_v28 = vld [vmem:[#allocation3 + $0x140] sm:$0xff] }
  0x9e   :  { %1593 = vmatprep.mubr.bf16.mxu1 %v3120_v47  ;;  %v3144_v52 = vpack.c.bf16 %v82_v39, %v76_v38  ;;  %v113_v38 = vld [vmem:[#allocation3 + $0x1a8] sm:$0xff]  ;;  %v119_v39 = vld [vmem:[#allocation3 + $0x1d8] sm:$0xff] }
  0x9f   :  { %1631 = vmatpush2.bf16.msra.mxu0 %v2812_v42  ;;  %v2844_v42 = vld [vmem:[#allocation5 + $0x2ac] ss:$16 sps:$4 sm:$0xff]  }
  0xa0   :  { %1744 = vmatpush2.bf16.msra.mxu1 %v2815_v45  ;;  %1632 = vmatprep.subr.bf16.mxu0 %v2820_v56  ;;  %v2847_v45 = vld [vmem:[#allocation5 + $0x4ac] ss:$16 sps:$4 sm:$0xff]  }
  0xa1   :  { %1745 = vmatprep.subr.bf16.mxu1 %v2823_v57  ;;  %v95_v56 = vld [vmem:[#allocation3 + $0x118] sm:$0xff] }
  0xa2   :  { %1481 = vmatmul.mubr.bf16.gmra.mxu0 %v3126_v60  ;;  %v2853_v57 = vld [vmem:[#allocation5 + $0x48c] ss:$16 sps:$4 sm:$0xff]   ;;  %v3146_v62 = vpack.c.bf16 %v95_v56, %v89_v55  ;;  %v3162_v55 = vpack.c.bf16 %v119_v39, %v113_v38  ;;  %v118_v56 = vld [vmem:[#allocation3 + $0x1d0] sm:$0xff]  ;;  %v2896_v38 = vld [vmem:[#allocation5 + $0x388] ss:$16 sps:$4 sm:$0xff]  }
  0xa3   :  { %1594 = vmatmul.mubr.bf16.gmra.mxu1 %v3128_v61  ;;  %1633 = vmatpush2.bf16.msra.mxu0 %v2818_v0  ;;  %v88_v0 = vld [vmem:[#allocation3 + $0xe0] sm:$0xff] }
  0xa4   :  { %1746 = vmatpush2.bf16.msra.mxu1 %v2821_v3  ;;  %1634 = vmatprep.subr.bf16.mxu0 %v2826_v6  ;;  %v94_v3 = vld [vmem:[#allocation3 + $0x110] sm:$0xff]  ;;  %v2856_v6 = vld [vmem:[#allocation5 + $0x26c] ss:$16 sps:$4 sm:$0xff]   ;;  %v136_v39 = vld [vmem:[#allocation3 + $0x260] sm:$0xff] }
  0xa5   :  { %1747 = vmatprep.subr.bf16.mxu1 %v2829_v7  ;;  %1636 = vmatprep.mubr.bf16.mxu0 %v3130_v10  ;;  %v2859_v7 = vld [vmem:[#allocation5 + $0x46c] ss:$16 sps:$4 sm:$0xff]   ;;  %v3152_v11 = vpack.c.bf16 %v94_v3, %v88_v0  ;;  %v2878_v3 = vld [vmem:[#allocation5 + $0x3e8] ss:$16 sps:$4 sm:$0xff]  }
  0xa6   :  { %1749 = vmatprep.mubr.bf16.mxu1 %v3036_v53  ;;  %v2839_v53 = vld [vmem:[#allocation5 + $0x4c8] ss:$16 sps:$4 sm:$0xff]  }
  0xa7   :  { %1635 = vmatpush2.bf16.msra.mxu0 %v2824_v8  ;;  %v2854_v8 = vld [vmem:[#allocation5 + $0x268] ss:$16 sps:$4 sm:$0xff]  }
  0xa8   :  { %1748 = vmatpush2.bf16.msra.mxu1 %v2827_v9  ;;  %1830 = vmatprep.subr.bf16.mxu0 %v2832_v19  ;;  %v2857_v9 = vld [vmem:[#allocation5 + $0x468] ss:$16 sps:$4 sm:$0xff]   ;;  %v2862_v19 = vld [vmem:[#allocation5 + $0x24c] ss:$16 sps:$4 sm:$0xff]  }
  0xa9   :  { %1943 = vmatprep.subr.bf16.mxu1 %v2835_v20  ;;  %v2865_v20 = vld [vmem:[#allocation5 + $0x44c] ss:$16 sps:$4 sm:$0xff]  }
  0xaa   :  { %1637 = vmatmul.mubr.bf16.vlgmr.msra.gmra.mxu0 %v3136_v22  ;;  %v131_v0 = vld [vmem:[#allocation3 + $0x238] sm:$0xff] }
  0xab   :  { %1750 = vmatmul.mubr.bf16.vlgmr.msra.gmra.mxu1 %v3042_v16  ;;  %1831 = vmatpush1.bf16.msra.mxu0 %v2830_v21  ;;  %v2850_v16 = vld [vmem:[#allocation5 + $0x28c] ss:$16 sps:$4 sm:$0xff]   ;;  %v2860_v21 = vld [vmem:[#allocation5 + $0x248] ss:$16 sps:$4 sm:$0xff]  }
  0xac   :  { %1944 = vmatpush1.bf16.msra.mxu1 %v2833_v27  ;;  %1832 = vmatprep.subr.bf16.mxu0 %v2838_v30  ;;  %v2868_v30 = vld [vmem:[#allocation5 + $0x22c] ss:$16 sps:$4 sm:$0xff]  }
  0xad   :  { %1945 = vmatprep.subr.bf16.mxu1 %v2841_v33  ;;  %1646 = vmatprep.mubr.bf16.mxu0 %v3138_v35  ;;  %v2871_v33 = vld [vmem:[#allocation5 + $0x42c] ss:$16 sps:$4 sm:$0xff]  }
  0xae   :  { %1759 = vmatprep.mubr.bf16.mxu1 %v3046_v23  ;;  %v2851_v23 = vld [vmem:[#allocation5 + $0x488] ss:$16 sps:$4 sm:$0xff]  }
  0xaf   :  { %1833 = vmatpush1.bf16.msra.mxu0 %v2836_v34  ;;  %v2866_v34 = vld [vmem:[#allocation5 + $0x228] ss:$16 sps:$4 sm:$0xff]  }
  0xb0   :  { %1946 = vmatpush1.bf16.msra.mxu1 %v2839_v53  ;;  %1834 = vmatprep.subr.bf16.mxu0 %v2844_v42  ;;  %v3160_v53 = vpack.c.bf16 %v106_v29, %v100_v28  ;;  %v2874_v42 = vld [vmem:[#allocation5 + $0x20c] ss:$16 sps:$4 sm:$0xff]   ;;  %v2893_v29 = vld [vmem:[#allocation5 + $0x5a8] ss:$16 sps:$4 sm:$0xff]  }
  0xb1   :  { %1947 = vmatprep.subr.bf16.mxu1 %v2847_v45  ;;  %v2877_v45 = vld [vmem:[#allocation5 + $0x40c] ss:$16 sps:$4 sm:$0xff]  }
  0xb2   :  { %1647 = vmatmul.mubr.bf16.gmra.mxu0 %v3144_v52  ;;  %v143_v28 = vld [vmem:[#allocation3 + $0x298] sm:$0xff] }
  0xb3   :  { %1760 = vmatmul.mubr.bf16.gmra.mxu1 %v3054_v36  ;;  %1835 = vmatpush1.bf16.msra.mxu0 %v2842_v48  ;;  %v107_v36 = vld [vmem:[#allocation3 + $0x178] sm:$0xff] }
  0xb4   :  { %1948 = vmatpush1.bf16.msra.mxu1 %v2845_v51  ;;  %1836 = vmatprep.subr.bf16.mxu0 %v2850_v16  ;;  %v3154_v27 = vpack.c.bf16 %v107_v36, %v101_v18  ;;  %v2872_v48 = vld [vmem:[#allocation5 + $0x208] ss:$16 sps:$4 sm:$0xff]   ;;  %v2880_v16 = vld [vmem:[#allocation5 + $0x3ec] ss:$16 sps:$4 sm:$0xff]   ;;  %v124_v18 = vld [vmem:[#allocation3 + $0x200] sm:$0xff] }
  0xb5   :  { %1949 = vmatprep.subr.bf16.mxu1 %v2853_v57  ;;  %1656 = vmatprep.mubr.bf16.mxu0 %v3146_v62  ;;  %v2875_v51 = vld [vmem:[#allocation5 + $0x408] ss:$16 sps:$4 sm:$0xff]   ;;  %v2883_v57 = vld [vmem:[#allocation5 + $0x5ec] ss:$16 sps:$4 sm:$0xff]   ;;  %v130_v36 = vld [vmem:[#allocation3 + $0x230] sm:$0xff] }
  0xb6   :  { %1769 = vmatprep.mubr.bf16.mxu1 %v3058_v43  ;;  %v2863_v43 = vld [vmem:[#allocation5 + $0x448] ss:$16 sps:$4 sm:$0xff]  }
  0xb7   :  { %1837 = vmatpush1.bf16.msra.mxu0 %v2848_v63 }
  0xb8   :  { %1950 = vmatpush1.bf16.msra.mxu1 %v2851_v23  ;;  %1838 = vmatprep.subr.bf16.mxu0 %v2856_v6  ;;  %v125_v23 = vld [vmem:[#allocation3 + $0x208] sm:$0xff] }
  0xb9   :  { %1951 = vmatprep.subr.bf16.mxu1 %v2859_v7  ;;  %v2886_v6 = vld [vmem:[#allocation5 + $0x3cc] ss:$16 sps:$4 sm:$0xff]  }
  0xba   :  { %1657 = vmatmul.mubr.bf16.gmra.mxu0 %v3152_v11  ;;  %v2889_v7 = vld [vmem:[#allocation5 + $0x5cc] ss:$16 sps:$4 sm:$0xff]  }
  0xbb   :  { %1770 = vmatmul.mubr.bf16.gmra.mxu1 %v3066_v58  ;;  %1839 = vmatpush1.bf16.msra.mxu0 %v2854_v8  ;;  %v2869_v58 = vld [vmem:[#allocation5 + $0x428] ss:$16 sps:$4 sm:$0xff]   ;;  %v3170_v8 = vpack.c.bf16 %v131_v0, %v125_v23 }
  0xbc   :  { %1952 = vmatpush1.bf16.msra.mxu1 %v2857_v9  ;;  %1840 = vmatprep.subr.bf16.mxu0 %v2862_v19  ;;  %v2884_v9 = vld [vmem:[#allocation5 + $0x3c8] ss:$16 sps:$4 sm:$0xff]   ;;  %v2892_v19 = vld [vmem:[#allocation5 + $0x3ac] ss:$16 sps:$4 sm:$0xff]  }
  0xbd   :  { %1953 = vmatprep.subr.bf16.mxu1 %v2865_v20  ;;  %1666 = vmatprep.mubr.bf16.mxu0 %v3154_v27  ;;  %v2895_v20 = vld [vmem:[#allocation5 + $0x5ac] ss:$16 sps:$4 sm:$0xff]   ;;  %v2908_v0 = vld [vmem:[#allocation5 + $0x348] ss:$16 sps:$4 sm:$0xff]  }
  0xbe   :  { %1779 = vmatprep.mubr.bf16.mxu1 %v3070_v1  ;;  %v112_v1 = vld [vmem:[#allocation3 + $0x1a0] sm:$0xff] }
  0xbf   :  { %1841 = vmatpush1.bf16.msra.mxu0 %v2860_v21  ;;  %v3168_v63 = vpack.c.bf16 %v118_v56, %v112_v1  ;;  %v3176_v21 = vpack.c.bf16 %v130_v36, %v124_v18  ;;  %v155_v1 = vld [vmem:[#allocation3 + $0x2f8] sm:$0xff] }
  0xc0   :  { %1954 = vmatpush1.bf16.msra.mxu1 %v2863_v43  ;;  %1842 = vmatprep.subr.bf16.mxu0 %v2868_v30  ;;  %v137_v43 = vld [vmem:[#allocation3 + $0x268] sm:$0xff] }
  0xc1   :  { %1955 = vmatprep.subr.bf16.mxu1 %v2871_v33  ;;  %v2898_v30 = vld [vmem:[#allocation5 + $0x38c] ss:$16 sps:$4 sm:$0xff]   ;;  %v2905_v56 = vld [vmem:[#allocation5 + $0x568] ss:$16 sps:$4 sm:$0xff]  }
  0xc2   :  { %1667 = vmatmul.mubr.bf16.gmra.mxu0 %v3160_v53  ;;  %v2901_v33 = vld [vmem:[#allocation5 + $0x58c] ss:$16 sps:$4 sm:$0xff]   ;;  %v2917_v18 = vld [vmem:[#allocation5 + $0x528] ss:$16 sps:$4 sm:$0xff]  }
  0xc3   :  { %1780 = vmatmul.mubr.bf16.gmra.mxu1 %v3078_v14  ;;  %1843 = vmatpush1.bf16.msra.mxu0 %v2866_v34  ;;  %v2881_v14 = vld [vmem:[#allocation5 + $0x5e8] ss:$16 sps:$4 sm:$0xff]   ;;  %v3178_v34 = vpack.c.bf16 %v143_v28, %v137_v43  ;;  %v2925_v36 = vld [vmem:[#allocation5 + $0x50c] ss:$16 sps:$4 sm:$0xff]  }
  0xc4   :  { %1956 = vmatpush1.bf16.msra.mxu1 %v2869_v58  ;;  %1844 = vmatprep.subr.bf16.mxu0 %v2874_v42  ;;  %v142_v58 = vld [vmem:[#allocation3 + $0x290] sm:$0xff]  ;;  %v2904_v42 = vld [vmem:[#allocation5 + $0x36c] ss:$16 sps:$4 sm:$0xff]  }
  0xc5   :  { %1957 = vmatprep.subr.bf16.mxu1 %v2877_v45  ;;  %1676 = vmatprep.mubr.bf16.mxu0 %v3162_v55  ;;  %v2907_v45 = vld [vmem:[#allocation5 + $0x56c] ss:$16 sps:$4 sm:$0xff]  }
  0xc6   :  { %1789 = vmatprep.mubr.bf16.mxu1 %v3082_v25  ;;  %v2887_v25 = vld [vmem:[#allocation5 + $0x5c8] ss:$16 sps:$4 sm:$0xff]  }
  0xc7   :  { %1845 = vmatpush1.bf16.msra.mxu0 %v2872_v48  ;;  %v3184_v48 = vpack.c.bf16 %v142_v58, %v136_v39 }
  0xc8   :  { %1958 = vmatpush1.bf16.msra.mxu1 %v2875_v51  ;;  %1846 = vmatprep.subr.bf16.mxu0 %v2880_v16  ;;  %v149_v51 = vld [vmem:[#allocation3 + $0x2c8] sm:$0xff] }
  0xc9   :  { %1959 = vmatprep.subr.bf16.mxu1 %v2883_v57  ;;  %v2910_v16 = vld [vmem:[#allocation5 + $0x34c] ss:$16 sps:$4 sm:$0xff]   ;;  %v203_v23 = vpack.c.bf16 %v155_v1, %v149_v51 }
  0xca   :  { %1677 = vmatmul.mubr.bf16.gmra.mxu0 %v3168_v63  ;;  %v2913_v57 = vld [vmem:[#allocation5 + $0x54c] ss:$16 sps:$4 sm:$0xff]  }
  0xcb   :  { %1790 = vmatmul.mubr.bf16.gmra.mxu1 %v3090_v40  ;;  %1847 = vmatpush2.bf16.msra.mxu0 %v2878_v3  ;;  %v2890_v40 = vld [vmem:[#allocation5 + $0x3a8] ss:$16 sps:$4 sm:$0xff]   ;;  %v148_v3 = vld [vmem:[#allocation3 + $0x2c0] sm:$0xff] }
  0xcc   :  { %1960 = vmatpush2.bf16.msra.mxu1 %v2881_v14  ;;  %1848 = vmatprep.subr.bf16.mxu0 %v2886_v6  ;;  %v154_v14 = vld [vmem:[#allocation3 + $0x2f0] sm:$0xff]  ;;  %v2916_v6 = vld [vmem:[#allocation5 + $0x32c] ss:$16 sps:$4 sm:$0xff]  }
  0xcd   :  { %1961 = vmatprep.subr.bf16.mxu1 %v2889_v7  ;;  %1686 = vmatprep.mubr.bf16.mxu0 %v3170_v8  ;;  %v2919_v7 = vld [vmem:[#allocation5 + $0x52c] ss:$16 sps:$4 sm:$0xff]  }
  0xce   :  { %1799 = vmatprep.mubr.bf16.mxu1 %v3094_v49  ;;  %v2899_v49 = vld [vmem:[#allocation5 + $0x588] ss:$16 sps:$4 sm:$0xff]  }
  0xcf   :  { %1849 = vmatpush2.bf16.msra.mxu0 %v2884_v9  ;;  %v202_v9 = vpack.c.bf16 %v154_v14, %v148_v3 }
  0xd0   :  { %1962 = vmatpush2.bf16.msra.mxu1 %v2887_v25  ;;  %1850 = vmatprep.subr.bf16.mxu0 %v2892_v19  ;;  %v2914_v25 = vld [vmem:[#allocation5 + $0x328] ss:$16 sps:$4 sm:$0xff]  }
  0xd1   :  { %1963 = vmatprep.subr.bf16.mxu1 %v2895_v20  ;;  %v2920_v19 = vld [vmem:[#allocation5 + $0x308] ss:$16 sps:$4 sm:$0xff]  }
  0xd2   :  { %1687 = vmatmul.mubr.bf16.gmra.mxu0 %v3176_v21  ;;  %v2923_v20 = vld [vmem:[#allocation5 + $0x508] ss:$16 sps:$4 sm:$0xff]  }
  0xd3   :  { %1800 = vmatmul.mubr.bf16.gmra.mxu1 %v3102_v4  ;;  %1851 = vmatpush2.bf16.msra.mxu0 %v2890_v40  ;;  %v2902_v4 = vld [vmem:[#allocation5 + $0x368] ss:$16 sps:$4 sm:$0xff]  }
  0xd4   :  { %1964 = vmatpush2.bf16.msra.mxu1 %v2893_v29  ;;  %1852 = vmatprep.subr.bf16.mxu0 %v2898_v30 }
  0xd5   :  { %1965 = vmatprep.subr.bf16.mxu1 %v2901_v33  ;;  %1696 = vmatprep.mubr.bf16.mxu0 %v3178_v34 }
  0xd6   :  { %1809 = vmatprep.mubr.bf16.mxu1 %v3106_v12  ;;  %v2911_v12 = vld [vmem:[#allocation5 + $0x548] ss:$16 sps:$4 sm:$0xff]  }
  0xd7   :  { %1853 = vmatpush2.bf16.msra.mxu0 %v2896_v38 }
  0xd8   :  { %1966 = vmatpush2.bf16.msra.mxu1 %v2899_v49  ;;  %1854 = vmatprep.subr.bf16.mxu0 %v2904_v42 }
  0xd9   :  { %1967 = vmatprep.subr.bf16.mxu1 %v2907_v45 }
  0xda   :  { %1697 = vmatmul.mubr.bf16.gmra.mxu0 %v3184_v48 }
  0xdb   :  { %1810 = vmatmul.mubr.bf16.gmra.mxu1 %v3114_v31  ;;  %1855 = vmatpush2.bf16.msra.mxu0 %v2902_v4  ;;  %v2922_v31 = vld [vmem:[#allocation5 + $0x30c] ss:$16 sps:$4 sm:$0xff]  }
  0xdc   :  { %1968 = vmatpush2.bf16.msra.mxu1 %v2905_v56  ;;  %1856 = vmatprep.subr.bf16.mxu0 %v2910_v16 }
  0xdd   :  { %1969 = vmatprep.subr.bf16.mxu1 %v2913_v57  ;;  %1706 = vmatprep.mubr.bf16.mxu0 %v203_v23 }
  0xde   :  { %1819 = vmatprep.mubr.bf16.mxu1 %v3118_v46 }
  0xdf   :  { %1857 = vmatpush2.bf16.msra.mxu0 %v2908_v0 }
  0xe0   :  { %1970 = vmatpush2.bf16.msra.mxu1 %v2911_v12  ;;  %1858 = vmatprep.subr.bf16.mxu0 %v2916_v6 }
  0xe1   :  { %1971 = vmatprep.subr.bf16.mxu1 %v2919_v7 }
  0xe2   :  { %1707 = vmatmul.mubr.bf16.gmra.mxu0 %v202_v9 }
  0xe3   :  { %1820 = vmatmul.mubr.bf16.gmra.mxu1 %v3126_v60  ;;  %1859 = vmatpush2.bf16.msra.mxu0 %v2914_v25 }
  0xe4   :  { %1972 = vmatpush2.bf16.msra.mxu1 %v2917_v18  ;;  %1860 = vmatprep.subr.bf16.mxu0 %v2922_v31 }
  0xe5   :  { %1973 = vmatprep.subr.bf16.mxu1 %v2925_v36  ;;  %1862 = vmatprep.mubr.bf16.mxu0 %v3038_v54  ;;  %v3707_v54 = vlaneseq }
  0xe6   :  { %1975 = vmatprep.mubr.bf16.mxu1 %v3130_v10 }
  0xe7   :  { %1861 = vmatpush2.bf16.msra.mxu0 %v2920_v19 }
  0xe8   :  { %1974 = vmatpush2.bf16.msra.mxu1 %v2923_v20 }
  0xea   :  { %1863 = vmatmul.mubr.bf16.vlgmr.msra.gmra.mxu0 %v3044_v17  ;;  %v3220_v17 = vshrl.u32 %v3707_v54, 7 }
  0xeb   :  { %1976 = vmatmul.mubr.bf16.vlgmr.msra.gmra.mxu1 %v3136_v22  ;;  %1872 = vmatprep.mubr.bf16.mxu0 %v3048_v24 }
  0xec   :  { %1985 = vmatprep.mubr.bf16.mxu1 %v3138_v35  ;;  %3710 = vst [vmem:[#allocation10_spill] sm:$0xff] %v3220_v17  ;;  %v400_v24 = vsub.s32 0, %v3220_v17 }
  0xf2   :  { %1873 = vmatmul.mubr.bf16.gmra.mxu0 %v3056_v37  ;;  %v3227_v37 = vld [vmem:[%s3703_s2] sm:$0xf] }
  0xf3   :  { %1986 = vmatmul.mubr.bf16.gmra.mxu1 %v3144_v52  ;;  %1882 = vmatprep.mubr.bf16.mxu0 %v3060_v44  ;;  %v404_v44 = vsub.s32 1, %v3220_v17 }
  0xf4   :  { %1995 = vmatprep.mubr.bf16.mxu1 %v3146_v62 }
  0xfa   :  { %1883 = vmatmul.mubr.bf16.gmra.mxu0 %v3068_v59  ;;  %v3233_v59 = vrot.slane %v3227_v37, %v400_v24 }
  0xfb   :  { %1996 = vmatmul.mubr.bf16.gmra.mxu1 %v3152_v11  ;;  %1892 = vmatprep.mubr.bf16.mxu0 %v3072_v2  ;;  %v3238_v2 = vrot.slane %v3227_v37, %v404_v44 }
  0xfc   :  { %2005 = vmatprep.mubr.bf16.mxu1 %v3154_v27 }
 0x102   :  { %1893 = vmatmul.mubr.bf16.gmra.mxu0 %v3080_v15 }
 0x103   :  { %2006 = vmatmul.mubr.bf16.gmra.mxu1 %v3160_v53  ;;  %1902 = vmatprep.mubr.bf16.mxu0 %v3084_v26 }
 0x104   :  { %2015 = vmatprep.mubr.bf16.mxu1 %v3162_v55 }
 0x10a   :  { %1903 = vmatmul.mubr.bf16.gmra.mxu0 %v3092_v41 }
 0x10b   :  { %2016 = vmatmul.mubr.bf16.gmra.mxu1 %v3168_v63  ;;  %1912 = vmatprep.mubr.bf16.mxu0 %v3096_v50 }
 0x10c   :  { %2025 = vmatprep.mubr.bf16.mxu1 %v3170_v8 }
 0x112   :  { %1913 = vmatmul.mubr.bf16.gmra.mxu0 %v3104_v5 }
 0x113   :  { %2026 = vmatmul.mubr.bf16.gmra.mxu1 %v3176_v21  ;;  %1922 = vmatprep.mubr.bf16.mxu0 %v3108_v13 }
 0x114   :  { %2035 = vmatprep.mubr.bf16.mxu1 %v3178_v34 }
 0x11a   :  { %1923 = vmatmul.mubr.bf16.gmra.mxu0 %v3116_v32 }
 0x11b   :  { %2036 = vmatmul.mubr.bf16.gmra.mxu1 %v3184_v48  ;;  %1932 = vmatprep.mubr.bf16.mxu0 %v3120_v47 }
 0x11c   :  { %2045 = vmatprep.mubr.bf16.mxu1 %v203_v23 }
 0x122   :  { %1933 = vmatmul.mubr.bf16.gmra.mxu0 %v3128_v61 }
 0x123   :  { %2046 = vmatmul.mubr.bf16.gmra.mxu1 %v202_v9 }
 0x12a   :  { %v1412_v15 = vpop.f32.mrf.mxu0 }
 0x12b   :  { %v1525_v26 = vpop.f32.mrf.mxu1  ;;  %v1413_v41 = vadd.f32 %v1412_v15, %v3233_v59 }
 0x12c   :  { %v1414_v50 = vpop.f32.mrf.mxu0 }
 0x12d   :  { %v1527_v5 = vpop.f32.mrf.mxu1  ;;  %v3241_v13 = vadd.f32 %v1525_v26, %v1413_v41  ;;  %v1415_v32 = vadd.f32 %v1414_v50, %v3238_v2 }
 0x12e   :  { %v1416_v46 = vpop.f32.mrf.mxu0 }
 0x12f   :  { %v1529_v47 = vpop.f32.mrf.mxu1  ;;  %v3244_v60 = vadd.f32 %v1527_v5, %v1415_v32  ;;  %v1417_v61 = vadd.f32 %v1416_v46, %v3233_v59 }
 0x130   :  { %v1418_v10 = vpop.f32.mrf.mxu0 }
 0x131   :  { %v1531_v22 = vpop.f32.mrf.mxu1  ;;  %v3247_v35 = vadd.f32 %v1529_v47, %v1417_v61  ;;  %v1419_v52 = vadd.f32 %v1418_v10, %v3238_v2 }
 0x132   :  { %v1422_v62 = vpop.f32.mrf.mxu0 }
 0x133   :  { %v1535_v11 = vpop.f32.mrf.mxu1  ;;  %v3250_v27 = vadd.f32 %v1531_v22, %v1419_v52  ;;  %v1423_v53 = vadd.f32 %v1422_v62, %v3233_v59 }
 0x134   :  { %v1424_v55 = vpop.f32.mrf.mxu0 }
 0x135   :  { %v1537_v63 = vpop.f32.mrf.mxu1  ;;  %v3253_v8 = vadd.f32 %v1535_v11, %v1423_v53  ;;  %v1425_v21 = vadd.f32 %v1424_v55, %v3238_v2 }
 0x136   :  { %v1426_v43 = vpop.f32.mrf.mxu0 }
 0x137   :  { %v1539_v28 = vpop.f32.mrf.mxu1  ;;  %v3256_v40 = vadd.f32 %v1537_v63, %v1425_v21  ;;  %v1427_v29 = vadd.f32 %v1426_v43, %v3233_v59 }
 0x138   :  { %v1428_v30 = vpop.f32.mrf.mxu0 }
 0x139   :  { %v1541_v33 = vpop.f32.mrf.mxu1  ;;  %v3259_v34 = vadd.f32 %v1539_v28, %v1427_v29  ;;  %v1429_v38 = vadd.f32 %v1428_v30, %v3238_v2 }
 0x13a   :  { %v1432_v49 = vpop.f32.mrf.mxu0 }
 0x13b   :  { %v1545_v39 = vpop.f32.mrf.mxu1  ;;  %v3262_v58 = vadd.f32 %v1541_v33, %v1429_v38  ;;  %v1433_v42 = vadd.f32 %v1432_v49, %v3233_v59 }
 0x13c   :  { %v1434_v45 = vpop.f32.mrf.mxu0 }
 0x13d   :  { %v1547_v48 = vpop.f32.mrf.mxu1  ;;  %v3265_v51 = vadd.f32 %v1545_v39, %v1433_v42  ;;  %v1435_v1 = vadd.f32 %v1434_v45, %v3238_v2 }
 0x13e   :  { %v1436_v4 = vpop.f32.mrf.mxu0 }
 0x13f   :  { %v1549_v56 = vpop.f32.mrf.mxu1  ;;  %v3268_v16 = vadd.f32 %v1547_v48, %v1435_v1  ;;  %v1437_v57 = vadd.f32 %v1436_v4, %v3233_v59 }
 0x140   :  { %v1438_v23 = vpop.f32.mrf.mxu0 }
 0x141   :  { %v1551_v0 = vpop.f32.mrf.mxu1  ;;  %v3271_v12 = vadd.f32 %v1549_v56, %v1437_v57  ;;  %v1439_v3 = vadd.f32 %v1438_v23, %v3238_v2 }
 0x142   :  { %v1442_v14 = vpop.f32.mrf.mxu0 }
 0x143   :  { %v1555_v6 = vpop.f32.mrf.mxu1  ;;  %v3274_v7 = vadd.f32 %v1551_v0, %v1439_v3  ;;  %v1443_v9 = vadd.f32 %v1442_v14, %v3233_v59 }
 0x144   :  { %v1444_v25 = vpop.f32.mrf.mxu0 }
 0x145   :  { %v1557_v18 = vpop.f32.mrf.mxu1  ;;  %v3277_v31 = vadd.f32 %v1555_v6, %v1443_v9  ;;  %v1445_v36 = vadd.f32 %v1444_v25, %v3238_v2 }
 0x146   :  { %v1446_v19 = vpop.f32.mrf.mxu0 }
 0x147   :  { %v1559_v20 = vpop.f32.mrf.mxu1  ;;  %v3280_v15 = vadd.f32 %v1557_v18, %v1445_v36  ;;  %v1447_v26 = vadd.f32 %v1446_v19, %v3233_v59 }
 0x148   :  { %v1448_v41 = vpop.f32.mrf.mxu0 }
 0x149   :  { %v1561_v50 = vpop.f32.mrf.mxu1  ;;  %v3283_v5 = vadd.f32 %v1559_v20, %v1447_v26  ;;  %v1449_v32 = vadd.f32 %v1448_v41, %v3238_v2 }
 0x14a   :  { %v1452_v46 = vpop.f32.mrf.mxu0 }
 0x14b   :  { %v1565_v47 = vpop.f32.mrf.mxu1  ;;  %v3286_v61 = vadd.f32 %v1561_v50, %v1449_v32  ;;  %v1453_v10 = vadd.f32 %v1452_v46, %v3233_v59 }
 0x14c   :  { %v1454_v22 = vpop.f32.mrf.mxu0 }
 0x14d   :  { %v1567_v52 = vpop.f32.mrf.mxu1  ;;  %v3289_v62 = vadd.f32 %v1565_v47, %v1453_v10  ;;  %v1455_v11 = vadd.f32 %v1454_v22, %v3238_v2 }
 0x14e   :  { %v1456_v53 = vpop.f32.mrf.mxu0 }
 0x14f   :  { %v1569_v55 = vpop.f32.mrf.mxu1  ;;  %v3292_v63 = vadd.f32 %v1567_v52, %v1455_v11  ;;  %v1457_v21 = vadd.f32 %v1456_v53, %v3233_v59 }
 0x150   :  { %v1458_v43 = vpop.f32.mrf.mxu0 }
 0x151   :  { %v1571_v28 = vpop.f32.mrf.mxu1  ;;  %v3295_v29 = vadd.f32 %v1569_v55, %v1457_v21  ;;  %v1459_v30 = vadd.f32 %v1458_v43, %v3238_v2 }
 0x152   :  { %v1462_v33 = vpop.f32.mrf.mxu0 }
 0x153   :  { %v1575_v38 = vpop.f32.mrf.mxu1  ;;  %v3298_v49 = vadd.f32 %v1571_v28, %v1459_v30  ;;  %v1463_v39 = vadd.f32 %v1462_v33, %v3233_v59 }
 0x154   :  { %v1464_v42 = vpop.f32.mrf.mxu0 }
 0x155   :  { %v1577_v45 = vpop.f32.mrf.mxu1  ;;  %v3301_v48 = vadd.f32 %v1575_v38, %v1463_v39  ;;  %v1465_v1 = vadd.f32 %v1464_v42, %v3238_v2 }
 0x156   :  { %v1466_v4 = vpop.f32.mrf.mxu0 }
 0x157   :  { %v1579_v56 = vpop.f32.mrf.mxu1  ;;  %v3304_v57 = vadd.f32 %v1577_v45, %v1465_v1  ;;  %v1467_v23 = vadd.f32 %v1466_v4, %v3233_v59 }
 0x158   :  { %v1468_v0 = vpop.f32.mrf.mxu0 }
 0x159   :  { %v1581_v3 = vpop.f32.mrf.mxu1  ;;  %v3307_v14 = vadd.f32 %v1579_v56, %v1467_v23  ;;  %v1469_v6 = vadd.f32 %v1468_v0, %v3238_v2 }
 0x15a   :  { %v1472_v9 = vpop.f32.mrf.mxu0 }
 0x15b   :  { %v1585_v25 = vpop.f32.mrf.mxu1  ;;  %v3310_v18 = vadd.f32 %v1581_v3, %v1469_v6  ;;  %v1473_v36 = vadd.f32 %v1472_v9, %v3233_v59 }
 0x15c   :  { %v1474_v19 = vpop.f32.mrf.mxu0 }
 0x15d   :  { %v1587_v20 = vpop.f32.mrf.mxu1  ;;  %v3313_v26 = vadd.f32 %v1585_v25, %v1473_v36  ;;  %v1475_v41 = vadd.f32 %v1474_v19, %v3238_v2  ;;  %v3339_v36 = vld [vmem:[#allocation7] sm:$0xf] }
 0x15e   :  { %v1476_v50 = vpop.f32.mrf.mxu0 }
 0x15f   :  { %v1589_v32 = vpop.f32.mrf.mxu1  ;;  %v3316_v46 = vadd.f32 %v1587_v20, %v1475_v41  ;;  %v1477_v47 = vadd.f32 %v1476_v50, %v3233_v59  ;;  %v3347_v41 = vrot.slane %v3339_v36, %v404_v44  ;;  %v3352_v50 = vrot.slane %v3339_v36, %v400_v24 }
 0x160   :  { %v1478_v10 = vpop.f32.mrf.mxu0 }
 0x161   :  { %v1591_v22 = vpop.f32.mrf.mxu1  ;;  %v3319_v52 = vadd.f32 %v1589_v32, %v1477_v47  ;;  %v1479_v11 = vadd.f32 %v1478_v10, %v3238_v2 }
 0x162   :  { %v1482_v53 = vpop.f32.mrf.mxu0 }
 0x163   :  { %v1595_v55 = vpop.f32.mrf.mxu1  ;;  %v3322_v21 = vadd.f32 %v1591_v22, %v1479_v11  ;;  %v1483_v43 = vadd.f32 %v1482_v53, %v3233_v59 }
 0x164   :  { %v1484_v28 = vpop.f32.mrf.mxu0 }
 0x165   :  { %v1597_v30 = vpop.f32.mrf.mxu1  ;;  %v3325_v33 = vadd.f32 %v1595_v55, %v1483_v43  ;;  %v1485_v38 = vadd.f32 %v1484_v28, %v3238_v2 }
 0x166   :  { %v1486_v39 = vpop.f32.mrf.mxu0 }
 0x167   :  { %v1599_v42 = vpop.f32.mrf.mxu1  ;;  %v3328_v45 = vadd.f32 %v1597_v30, %v1485_v38  ;;  %v1487_v1 = vadd.f32 %v1486_v39, %v3233_v59 }
 0x168   :  { %v1488_v4 = vpop.f32.mrf.mxu0 }
 0x169   :  { %v1601_v56 = vpop.f32.mrf.mxu1  ;;  %v3331_v23 = vadd.f32 %v1599_v42, %v1487_v1  ;;  %v1489_v0 = vadd.f32 %v1488_v4, %v3238_v2 }
 0x16a   :  { %v1638_v3 = vpop.f32.mrf.mxu0 }
 0x16b   :  { %v3334_v6 = vpop.f32.mrf.mxu1  ;;  %v3336_v9 = vadd.f32 %v1601_v56, %v1489_v0  ;;  %v1639_v25 = vadd.f32 %v1638_v3, %v3241_v13 }
 0x16c   :  { %v1640_v19 = vpop.f32.mrf.mxu0 }
 0x16d   :  { %v3341_v20 = vpop.f32.mrf.mxu1  ;;  %v1641_v59 = vadd.f32 %v1640_v19, %v3244_v60  ;;  %v2056_v2 = vmax.f32 %v1639_v25, 0.0 }
 0x16e   :  { %v1642_v32 = vpop.f32.mrf.mxu0 }
 0x16f   :  { %v3354_v13 = vpop.f32.mrf.mxu1  ;;  %v2057_v47 = vmax.f32 %v1641_v59, 0.0  ;;  %v1643_v10 = vadd.f32 %v1642_v32, %v3247_v35  ;;  %v2142_v55 = vmul.f32 %v3352_v50, %v2056_v2 }
 0x170   :  { %v1644_v22 = vpop.f32.mrf.mxu0 }
 0x171   :  { %v3357_v11 = vpop.f32.mrf.mxu1  ;;  %v2143_v60 = vmul.f32 %v3347_v41, %v2057_v47  ;;  %v2060_v53 = vmax.f32 %v1643_v10, 0.0  ;;  %v1645_v44 = vadd.f32 %v1644_v22, %v3250_v27 }
 0x172   :  { %v1648_v43 = vpop.f32.mrf.mxu0 }
 0x173   :  { %v3362_v28 = vpop.f32.mrf.mxu1  ;;  %v2061_v24 = vmax.f32 %v1645_v44, 0.0  ;;  %v1649_v30 = vadd.f32 %v1648_v43, %v3253_v8  ;;  %v3367_v35 = vadd.f32 %v2143_v60, %v2142_v55  ;;  %v2146_v42 = vmul.f32 %v3352_v50, %v2060_v53 }
 0x174   :  { %v1650_v38 = vpop.f32.mrf.mxu0 }
 0x175   :  { %v3365_v39 = vpop.f32.mrf.mxu1  ;;  %v2147_v1 = vmul.f32 %v3347_v41, %v2061_v24  ;;  %v1651_v4 = vadd.f32 %v1650_v38, %v3256_v40  ;;  %v2064_v27 = vmax.f32 %v1649_v30, 0.0 }
 0x176   :  { %v1652_v56 = vpop.f32.mrf.mxu0 }
 0x177   :  { %v3372_v0 = vpop.f32.mrf.mxu1  ;;  %v3374_v3 = vadd.f32 %v2147_v1, %v2146_v42  ;;  %v2065_v25 = vmax.f32 %v1651_v4, 0.0  ;;  %v1653_v8 = vadd.f32 %v1652_v56, %v3259_v34  ;;  %v2150_v10 = vmul.f32 %v3352_v50, %v2064_v27 }
 0x178   :  { %v1654_v19 = vpop.f32.mrf.mxu0 }
 0x179   :  { %v3377_v59 = vpop.f32.mrf.mxu1  ;;  %v2151_v2 = vmul.f32 %v3347_v41, %v2065_v25  ;;  %v2068_v32 = vmax.f32 %v1653_v8, 0.0  ;;  %v1655_v47 = vadd.f32 %v1654_v19, %v3262_v58 }
 0x17a   :  { %v1658_v40 = vpop.f32.mrf.mxu0 }
 0x17b   :  { %v3382_v22 = vpop.f32.mrf.mxu1  ;;  %v2069_v60 = vmax.f32 %v1655_v47, 0.0  ;;  %v1659_v53 = vadd.f32 %v1658_v40, %v3265_v51  ;;  %v3387_v34 = vadd.f32 %v2151_v2, %v2150_v10  ;;  %v2154_v43 = vmul.f32 %v3352_v50, %v2068_v32 }
 0x17c   :  { %v1660_v44 = vpop.f32.mrf.mxu0 }
 0x17d   :  { %v3385_v55 = vpop.f32.mrf.mxu1  ;;  %v2155_v24 = vmul.f32 %v3347_v41, %v2069_v60  ;;  %v2072_v30 = vmax.f32 %v1659_v53, 0.0  ;;  %v1661_v58 = vadd.f32 %v1660_v44, %v3268_v16 }
 0x17e   :  { %v1662_v38 = vpop.f32.mrf.mxu0 }
 0x17f   :  { %v3392_v42 = vpop.f32.mrf.mxu1  ;;  %v3394_v1 = vadd.f32 %v2155_v24, %v2154_v43  ;;  %v2073_v4 = vmax.f32 %v1661_v58, 0.0  ;;  %v1663_v51 = vadd.f32 %v1662_v38, %v3271_v12  ;;  %v2158_v25 = vmul.f32 %v3352_v50, %v2072_v30 }
 0x180   :  { %v1664_v27 = vpop.f32.mrf.mxu0 }
 0x181   :  { %v3397_v56 = vpop.f32.mrf.mxu1  ;;  %v2159_v8 = vmul.f32 %v3347_v41, %v2073_v4  ;;  %v2076_v19 = vmax.f32 %v1663_v51, 0.0  ;;  %v1665_v2 = vadd.f32 %v1664_v27, %v3274_v7 }
 0x182   :  { %v1668_v32 = vpop.f32.mrf.mxu0 }
 0x183   :  { %v3402_v16 = vpop.f32.mrf.mxu1  ;;  %v3404_v47 = vadd.f32 %v2159_v8, %v2158_v25  ;;  %v2077_v10 = vmax.f32 %v1665_v2, 0.0  ;;  %v1669_v40 = vadd.f32 %v1668_v32, %v3277_v31  ;;  %v2162_v53 = vmul.f32 %v3352_v50, %v2076_v19 }
 0x184   :  { %v1670_v60 = vpop.f32.mrf.mxu0 }
 0x185   :  { %v3407_v12 = vpop.f32.mrf.mxu1  ;;  %v2163_v44 = vmul.f32 %v3347_v41, %v2077_v10  ;;  %v2080_v43 = vmax.f32 %v1669_v40, 0.0  ;;  %v1671_v24 = vadd.f32 %v1670_v60, %v3280_v15 }
 0x186   :  { %v1672_v30 = vpop.f32.mrf.mxu0 }
 0x187   :  { %v3412_v7 = vpop.f32.mrf.mxu1  ;;  %v3414_v58 = vadd.f32 %v2163_v44, %v2162_v53  ;;  %v2081_v38 = vmax.f32 %v1671_v24, 0.0  ;;  %v1673_v4 = vadd.f32 %v1672_v30, %v3283_v5  ;;  %v2166_v27 = vmul.f32 %v3352_v50, %v2080_v43 }
 0x188   :  { %v1674_v51 = vpop.f32.mrf.mxu0 }
 0x189   :  { %v3417_v31 = vpop.f32.mrf.mxu1  ;;  %v2167_v25 = vmul.f32 %v3347_v41, %v2081_v38  ;;  %v2084_v8 = vmax.f32 %v1673_v4, 0.0  ;;  %v1675_v19 = vadd.f32 %v1674_v51, %v3286_v61 }
 0x18a   :  { %v1678_v2 = vpop.f32.mrf.mxu0 }
 0x18b   :  { %v3422_v15 = vpop.f32.mrf.mxu1  ;;  %v3424_v32 = vadd.f32 %v2167_v25, %v2166_v27  ;;  %v2085_v10 = vmax.f32 %v1675_v19, 0.0  ;;  %v1679_v40 = vadd.f32 %v1678_v2, %v3289_v62  ;;  %v2170_v53 = vmul.f32 %v3352_v50, %v2084_v8 }
 0x18c   :  { %v1680_v60 = vpop.f32.mrf.mxu0 }
 0x18d   :  { %v3427_v5 = vpop.f32.mrf.mxu1  ;;  %v2171_v44 = vmul.f32 %v3347_v41, %v2085_v10  ;;  %v2088_v43 = vmax.f32 %v1679_v40, 0.0  ;;  %v1681_v24 = vadd.f32 %v1680_v60, %v3292_v63 }
 0x18e   :  { %v1682_v30 = vpop.f32.mrf.mxu0 }
 0x18f   :  { %v3432_v61 = vpop.f32.mrf.mxu1  ;;  %v3434_v38 = vadd.f32 %v2171_v44, %v2170_v53  ;;  %v2089_v4 = vmax.f32 %v1681_v24, 0.0  ;;  %v1683_v51 = vadd.f32 %v1682_v30, %v3295_v29  ;;  %v2174_v25 = vmul.f32 %v3352_v50, %v2088_v43 }
 0x190   :  { %v1684_v27 = vpop.f32.mrf.mxu0 }
 0x191   :  { %v3437_v62 = vpop.f32.mrf.mxu1  ;;  %v2175_v8 = vmul.f32 %v3347_v41, %v2089_v4  ;;  %v2092_v19 = vmax.f32 %v1683_v51, 0.0  ;;  %v1685_v2 = vadd.f32 %v1684_v27, %v3298_v49 }
 0x192   :  { %v1688_v10 = vpop.f32.mrf.mxu0 }
 0x193   :  { %v3442_v63 = vpop.f32.mrf.mxu1  ;;  %v3444_v40 = vadd.f32 %v2175_v8, %v2174_v25  ;;  %v2093_v60 = vmax.f32 %v1685_v2, 0.0  ;;  %v1689_v53 = vadd.f32 %v1688_v10, %v3301_v48  ;;  %v2178_v24 = vmul.f32 %v3352_v50, %v2092_v19 }
 0x194   :  { %v1690_v44 = vpop.f32.mrf.mxu0 }
 0x195   :  { %v3447_v29 = vpop.f32.mrf.mxu1  ;;  %v2179_v43 = vmul.f32 %v3347_v41, %v2093_v60  ;;  %v2096_v30 = vmax.f32 %v1689_v53, 0.0  ;;  %v1691_v4 = vadd.f32 %v1690_v44, %v3304_v57 }
 0x196   :  { %v1692_v51 = vpop.f32.mrf.mxu0 }
 0x197   :  { %v3452_v49 = vpop.f32.mrf.mxu1  ;;  %v3454_v27 = vadd.f32 %v2179_v43, %v2178_v24  ;;  %v2097_v25 = vmax.f32 %v1691_v4, 0.0  ;;  %v1693_v8 = vadd.f32 %v1692_v51, %v3307_v14  ;;  %v2182_v10 = vmul.f32 %v3352_v50, %v2096_v30 }
 0x198   :  { %v1694_v2 = vpop.f32.mrf.mxu0 }
 0x199   :  { %3711 = vst [vmem:[#allocation11_spill] sm:$0xff] %v3454_v27  ;;  %v3457_v48 = vpop.f32.mrf.mxu1  ;;  %v2183_v19 = vmul.f32 %v3347_v41, %v2097_v25  ;;  %v2100_v54 = vmax.f32 %v1693_v8, 0.0  ;;  %v1695_v60 = vadd.f32 %v1694_v2, %v3310_v18 }
 0x19a   :  { %v1698_v53 = vpop.f32.mrf.mxu0 }
 0x19b   :  { %v3462_v57 = vpop.f32.mrf.mxu1  ;;  %v3464_v44 = vadd.f32 %v2183_v19, %v2182_v10  ;;  %v2101_v24 = vmax.f32 %v1695_v60, 0.0  ;;  %v1699_v43 = vadd.f32 %v1698_v53, %v3313_v26  ;;  %v2186_v51 = vmul.f32 %v3352_v50, %v2100_v54 }
 0x19c   :  { %v1700_v4 = vpop.f32.mrf.mxu0  ;;  %v408_v26 = vsub.s32 2, %v3220_v17 }
 0x19d   :  { %3712 = vst [vmem:[#allocation12_spill] sm:$0xff] %v3464_v44  ;;  %v3467_v14 = vpop.f32.mrf.mxu1  ;;  %v2187_v30 = vmul.f32 %v3347_v41, %v2101_v24  ;;  %v2104_v27 = vmax.f32 %v1699_v43, 0.0  ;;  %v1701_v25 = vadd.f32 %v1700_v4, %v3316_v46 }
 0x19e   :  { %v1702_v8 = vpop.f32.mrf.mxu0 }
 0x19f   :  { %v3472_v18 = vpop.f32.mrf.mxu1  ;;  %v3474_v2 = vadd.f32 %v2187_v30, %v2186_v51  ;;  %v2105_v10 = vmax.f32 %v1701_v25, 0.0  ;;  %v1703_v19 = vadd.f32 %v1702_v8, %v3319_v52  ;;  %v2190_v54 = vmul.f32 %v3352_v50, %v2104_v27 }
 0x1a0   :  { %v1704_v60 = vpop.f32.mrf.mxu0  ;;  %v412_v51 = vsub.s32 3, %v3220_v17  ;;  %v3490_v8 = vrot.slane %v3227_v37, %v408_v26 }
 0x1a1   :  { %3713 = vst [vmem:[#allocation13_spill] sm:$0xff] %v3474_v2  ;;  %v3478_v53 = vpop.f32.mrf.mxu1  ;;  %v2191_v24 = vmul.f32 %v3347_v41, %v2105_v10  ;;  %v2108_v43 = vmax.f32 %v1703_v19, 0.0  ;;  %v1705_v46 = vadd.f32 %v1704_v60, %v3322_v21 }
 0x1a2   :  { %v1708_v4 = vpop.f32.mrf.mxu0 }
 0x1a3   :  { %v3483_v44 = vpop.f32.mrf.mxu1  ;;  %v3486_v30 = vadd.f32 %v2191_v24, %v2190_v54  ;;  %v2109_v52 = vmax.f32 %v1705_v46, 0.0  ;;  %v1709_v25 = vadd.f32 %v1708_v4, %v3325_v33  ;;  %v2194_v10 = vmul.f32 %v3352_v50, %v2108_v43 }
 0x1a4   :  { %3714 = vst [vmem:[#allocation14_spill] sm:$0xff] %v3483_v44  ;;  %v1710_v2 = vpop.f32.mrf.mxu0  ;;  %v3500_v54 = vrot.slane %v3227_v37, %v412_v51  ;;  %v1752_v4 = vadd.f32 %v3334_v6, %v3490_v8  ;;  %v1756_v6 = vadd.f32 %v3354_v13, %v3490_v8 }
 0x1a5   :  { %3715 = vst [vmem:[#allocation15_spill] sm:$0xff] %v3486_v30  ;;  %v3492_v27 = vpop.f32.mrf.mxu1  ;;  %v2195_v21 = vmul.f32 %v3347_v41, %v2109_v52  ;;  %v2112_v19 = vmax.f32 %v1709_v25, 0.0  ;;  %v1711_v60 = vadd.f32 %v1710_v2, %v3328_v45 }
 0x1a6   :  { %v1712_v44 = vpop.f32.mrf.mxu0 }
 0x1a7   :  { %v3497_v17 = vpop.f32.mrf.mxu1  ;;  %v3502_v33 = vadd.f32 %v2195_v21, %v2194_v10  ;;  %v2113_v24 = vmax.f32 %v1711_v60, 0.0  ;;  %v1713_v46 = vadd.f32 %v1712_v44, %v3331_v23  ;;  %v2198_v52 = vmul.f32 %v3352_v50, %v2112_v19 }
 0x1a8   :  { %3716 = vst [vmem:[#allocation16_spill] sm:$0xff] %v3497_v17  ;;  %v1714_v43 = vpop.f32.mrf.mxu0  ;;  %v1754_v10 = vadd.f32 %v3341_v20, %v3500_v54  ;;  %v3519_v60 = vrot.slane %v3339_v36, %v408_v26  ;;  %v1758_v20 = vadd.f32 %v3357_v11, %v3500_v54 }
 0x1a9   :  { %3717 = vst [vmem:[#allocation17_spill] sm:$0xff] %v3502_v33  ;;  %v3507_v30 = vpop.f32.mrf.mxu1  ;;  %v2199_v45 = vmul.f32 %v3347_v41, %v2113_v24  ;;  %v2116_v2 = vmax.f32 %v1713_v46, 0.0  ;;  %v1715_v25 = vadd.f32 %v1714_v43, %v3336_v9 }
 0x1aa   :  { %v1864_v37 = vpop.f32.mrf.mxu0 }
 0x1ab   :  { %v1977_v17 = vpop.f32.mrf.mxu1  ;;  %v3514_v21 = vadd.f32 %v2199_v45, %v2198_v52  ;;  %v2117_v23 = vmax.f32 %v1715_v25, 0.0  ;;  %v1865_v44 = vadd.f32 %v1864_v37, %v1752_v4  ;;  %v2202_v46 = vmul.f32 %v3352_v50, %v2116_v2 }
 0x1ac   :  { %v1866_v19 = vpop.f32.mrf.mxu0  ;;  %v3526_v4 = vrot.slane %v3339_v36, %v412_v51  ;;  %v1762_v50 = vadd.f32 %v3362_v28, %v3490_v8  ;;  %v1766_v28 = vadd.f32 %v3372_v0, %v3490_v8 }
 0x1ad   :  { %v1979_v24 = vpop.f32.mrf.mxu1  ;;  %v2203_v9 = vmul.f32 %v3347_v41, %v2117_v23  ;;  %v1978_v43 = vadd.f32 %v1977_v17, %v1865_v44  ;;  %v1867_v33 = vadd.f32 %v1866_v19, %v1754_v10  ;;  %v1764_v44 = vadd.f32 %v3365_v39, %v3500_v54 }
 0x1ae   :  { %v1868_v52 = vpop.f32.mrf.mxu0  ;;  %v1768_v39 = vadd.f32 %v3377_v59, %v3500_v54 }
 0x1af   :  { %v1981_v45 = vpop.f32.mrf.mxu1  ;;  %v3528_v13 = vadd.f32 %v2203_v9, %v2202_v46  ;;  %v2058_v26 = vmax.f32 %v1978_v43, 0.0  ;;  %v1980_v25 = vadd.f32 %v1979_v24, %v1867_v33  ;;  %v1869_v37 = vadd.f32 %v1868_v52, %v1756_v6 }
 0x1b0   :  { %v1870_v2 = vpop.f32.mrf.mxu0 }
 0x1b1   :  { %v1983_v41 = vpop.f32.mrf.mxu1  ;;  %v2144_v17 = vmul.f32 %v3519_v60, %v2058_v26  ;;  %v2059_v10 = vmax.f32 %v1980_v25, 0.0  ;;  %v1982_v23 = vadd.f32 %v1981_v45, %v1869_v37  ;;  %v1871_v11 = vadd.f32 %v1870_v2, %v1758_v20 }
 0x1b2   :  { %v1874_v36 = vpop.f32.mrf.mxu0 }
 0x1b3   :  { %v1987_v51 = vpop.f32.mrf.mxu1  ;;  %v2062_v19 = vmax.f32 %v1982_v23, 0.0  ;;  %v1984_v46 = vadd.f32 %v1983_v41, %v1871_v11  ;;  %v1875_v9 = vadd.f32 %v1874_v36, %v1762_v50  ;;  %v2145_v33 = vmul.f32 %v3526_v4, %v2059_v10 }
 0x1b4   :  { %v1876_v6 = vpop.f32.mrf.mxu0  ;;  %v2207_v43 = vadd.f32 %v3367_v35, %v2144_v17  ;;  %v1772_v23 = vadd.f32 %v3382_v22, %v3490_v8 }
 0x1b5   :  { %v1989_v24 = vpop.f32.mrf.mxu1  ;;  %v2148_v52 = vmul.f32 %v3519_v60, %v2062_v19  ;;  %v2063_v20 = vmax.f32 %v1984_v46, 0.0  ;;  %v1988_v45 = vadd.f32 %v1987_v51, %v1875_v9  ;;  %v1877_v26 = vadd.f32 %v1876_v6, %v1764_v44 }
 0x1b6   :  { %v1878_v25 = vpop.f32.mrf.mxu0  ;;  %v2208_v50 = vadd.f32 %v2207_v43, %v2145_v33  ;;  %v1774_v19 = vadd.f32 %v3385_v55, %v3500_v54  ;;  %v1776_v43 = vadd.f32 %v3392_v42, %v3490_v8 }
 0x1b7   :  { %v1991_v37 = vpop.f32.mrf.mxu1  ;;  %v2149_v2 = vmul.f32 %v3526_v4, %v2063_v20  ;;  %v2066_v41 = vmax.f32 %v1988_v45, 0.0  ;;  %v1990_v10 = vadd.f32 %v1989_v24, %v1877_v26  ;;  %v1879_v0 = vadd.f32 %v1878_v25, %v1766_v28 }
 0x1b8   :  { %2209 = vadd.xlane.f32.xlu0 %v2208_v50  ;;  %v1880_v35 = vpop.f32.mrf.mxu0  ;;  %v2212_v11 = vadd.f32 %v3374_v3, %v2148_v52  ;;  %v1778_v25 = vadd.f32 %v3397_v56, %v3500_v54 }
 0x1b9   :  { %v1993_v17 = vpop.f32.mrf.mxu1  ;;  %v2152_v44 = vmul.f32 %v3519_v60, %v2066_v41  ;;  %v2067_v36 = vmax.f32 %v1990_v10, 0.0  ;;  %v1992_v59 = vadd.f32 %v1991_v37, %v1879_v0  ;;  %v1881_v51 = vadd.f32 %v1880_v35, %v1768_v39 }
 0x1ba   :  { %v1884_v46 = vpop.f32.mrf.mxu0  ;;  %v2213_v33 = vadd.f32 %v2212_v11, %v2149_v2 }
 0x1bb   :  { %v1997_v9 = vpop.f32.mrf.mxu1  ;;  %v2070_v28 = vmax.f32 %v1992_v59, 0.0  ;;  %v1994_v6 = vadd.f32 %v1993_v17, %v1881_v51  ;;  %v1885_v24 = vadd.f32 %v1884_v46, %v1772_v23  ;;  %v2153_v22 = vmul.f32 %v3526_v4, %v2067_v36 }
 0x1bc   :  { %2214 = vadd.xlane.f32.xlu0 %v2213_v33  ;;  %v1886_v3 = vpop.f32.mrf.mxu0  ;;  %v2217_v20 = vadd.f32 %v3387_v34, %v2152_v44  ;;  %v1782_v23 = vadd.f32 %v3402_v16, %v3490_v8  ;;  %v1784_v59 = vadd.f32 %v3407_v12, %v3500_v54 }
 0x1bd   :  { %v1999_v52 = vpop.f32.mrf.mxu1  ;;  %v2156_v45 = vmul.f32 %v3519_v60, %v2070_v28  ;;  %v2071_v26 = vmax.f32 %v1994_v6, 0.0  ;;  %v1998_v55 = vadd.f32 %v1997_v9, %v1885_v24  ;;  %v1887_v39 = vadd.f32 %v1886_v3, %v1774_v19 }
 0x1be   :  { %v1888_v37 = vpop.f32.mrf.mxu0  ;;  %v2218_v2 = vadd.f32 %v2217_v20, %v2153_v22  ;;  %v1786_v6 = vadd.f32 %v3412_v7, %v3490_v8  ;;  %v1788_v20 = vadd.f32 %v3417_v31, %v3500_v54 }
 0x1bf   :  { %v2001_v50 = vpop.f32.mrf.mxu1  ;;  %v2157_v41 = vmul.f32 %v3526_v4, %v2071_v26  ;;  %v2074_v10 = vmax.f32 %v1998_v55, 0.0  ;;  %v2000_v42 = vadd.f32 %v1999_v52, %v1887_v39  ;;  %v1889_v0 = vadd.f32 %v1888_v37, %v1776_v43 }
 0x1c0   :  { %2219 = vadd.xlane.f32.xlu1 %v2218_v2  ;;  %v1890_v34 = vpop.f32.mrf.mxu0  ;;  %v2222_v17 = vadd.f32 %v3394_v1, %v2156_v45 }
 0x1c1   :  { %v2003_v35 = vpop.f32.mrf.mxu1  ;;  %v2160_v11 = vmul.f32 %v3519_v60, %v2074_v10  ;;  %v2075_v44 = vmax.f32 %v2000_v42, 0.0  ;;  %v2002_v56 = vadd.f32 %v2001_v50, %v1889_v0  ;;  %v1891_v36 = vadd.f32 %v1890_v34, %v1778_v25 }
 0x1c2   :  { %v1894_v51 = vpop.f32.mrf.mxu0  ;;  %v2223_v46 = vadd.f32 %v2222_v17, %v2157_v41  ;;  %v1792_v50 = vadd.f32 %v3422_v15, %v3490_v8 }
 0x1c3   :  { %v2007_v19 = vpop.f32.mrf.mxu1  ;;  %v2161_v9 = vmul.f32 %v3526_v4, %v2075_v44  ;;  %v2078_v33 = vmax.f32 %v2002_v56, 0.0  ;;  %v2004_v16 = vadd.f32 %v2003_v35, %v1891_v36  ;;  %v1895_v28 = vadd.f32 %v1894_v51, %v1782_v23 }
 0x1c4   :  { %2224 = vadd.xlane.f32.xlu1 %v2223_v46  ;;  %v1896_v1 = vpop.f32.mrf.mxu0  ;;  %v2227_v22 = vadd.f32 %v3404_v47, %v2160_v11  ;;  %v1794_v23 = vadd.f32 %v3427_v5, %v3500_v54  ;;  %v1796_v36 = vadd.f32 %v3432_v61, %v3490_v8 }
 0x1c5   :  { %v2009_v24 = vpop.f32.mrf.mxu1  ;;  %v2164_v43 = vmul.f32 %v3519_v60, %v2078_v33  ;;  %v2079_v3 = vmax.f32 %v2004_v16, 0.0  ;;  %v2008_v12 = vadd.f32 %v2007_v19, %v1895_v28  ;;  %v1897_v52 = vadd.f32 %v1896_v1, %v1784_v59 }
 0x1c6   :  { %v1898_v45 = vpop.f32.mrf.mxu0  ;;  %v2228_v55 = vadd.f32 %v2227_v22, %v2161_v9  ;;  %v1798_v33 = vadd.f32 %v3437_v62, %v3500_v54 }
 0x1c7   :  { %v2011_v26 = vpop.f32.mrf.mxu1  ;;  %v2165_v39 = vmul.f32 %v3526_v4, %v2079_v3  ;;  %v2082_v25 = vmax.f32 %v2008_v12, 0.0  ;;  %v2010_v7 = vadd.f32 %v2009_v24, %v1897_v52  ;;  %v1899_v37 = vadd.f32 %v1898_v45, %v1786_v6 }
 0x1c8   :  { %2229 = vadd.xlane.f32.xlu0 %v2228_v55  ;;  %v1900_v47 = vpop.f32.mrf.mxu0  ;;  %v2232_v41 = vadd.f32 %v3414_v58, %v2164_v43  ;;  %v1802_v43 = vadd.f32 %v3442_v63, %v3490_v8 }
 0x1c9   :  { %v2013_v2 = vpop.f32.mrf.mxu1  ;;  %v2168_v10 = vmul.f32 %v3519_v60, %v2082_v25  ;;  %v2083_v42 = vmax.f32 %v2010_v7, 0.0  ;;  %v2012_v31 = vadd.f32 %v2011_v26, %v1899_v37  ;;  %v1901_v0 = vadd.f32 %v1900_v47, %v1788_v20 }
 0x1ca   :  { %v1904_v34 = vpop.f32.mrf.mxu0  ;;  %v2233_v17 = vadd.f32 %v2232_v41, %v2165_v39  ;;  %v1804_v26 = vadd.f32 %v3447_v29, %v3500_v54  ;;  %v1806_v47 = vadd.f32 %v3452_v49, %v3490_v8 }
 0x1cb   :  { %v2017_v35 = vpop.f32.mrf.mxu1  ;;  %v2169_v11 = vmul.f32 %v3526_v4, %v2083_v42  ;;  %v2086_v44 = vmax.f32 %v2012_v31, 0.0  ;;  %v2014_v15 = vadd.f32 %v2013_v2, %v1901_v0  ;;  %v1905_v56 = vadd.f32 %v1904_v34, %v1792_v50 }
 0x1cc   :  { %2234 = vadd.xlane.f32.xlu1 %v2233_v17  ;;  %v1906_v58 = vpop.f32.mrf.mxu0  ;;  %v2237_v51 = vadd.f32 %v3424_v32, %v2168_v10  ;;  %v1808_v0 = vadd.f32 %v3457_v48, %v3500_v54 }
 0x1cd   :  { %v2019_v59 = vpop.f32.mrf.mxu1  ;;  %v2172_v19 = vmul.f32 %v3519_v60, %v2086_v44  ;;  %v2087_v46 = vmax.f32 %v2014_v15, 0.0  ;;  %v2018_v5 = vadd.f32 %v2017_v35, %v1905_v56  ;;  %v1907_v9 = vadd.f32 %v1906_v58, %v1794_v23 }
 0x1ce   :  { %v1908_v16 = vpop.f32.mrf.mxu0  ;;  %v2238_v6 = vadd.f32 %v2237_v51, %v2169_v11  ;;  %v1812_v15 = vadd.f32 %v3462_v57, %v3490_v8 }
 0x1cf   :  { %v2021_v28 = vpop.f32.mrf.mxu1  ;;  %v2173_v1 = vmul.f32 %v3526_v4, %v2087_v46  ;;  %v2090_v24 = vmax.f32 %v2018_v5, 0.0  ;;  %v2020_v61 = vadd.f32 %v2019_v59, %v1907_v9  ;;  %v1909_v22 = vadd.f32 %v1908_v16, %v1796_v36  ;;  %v3718_v36 = vld [vmem:[#allocation11_spill] sm:$0xff] }
 0x1d0   :  { %2239 = vadd.xlane.f32.xlu0 %v2238_v6  ;;  %v1910_v32 = vpop.f32.mrf.mxu0  ;;  %v2242_v12 = vadd.f32 %v3434_v38, %v2172_v19  ;;  %v1814_v46 = vadd.f32 %v3467_v14, %v3500_v54 }
 0x1d1   :  { %v2023_v3 = vpop.f32.mrf.mxu1  ;;  %v2176_v52 = vmul.f32 %v3519_v60, %v2090_v24  ;;  %v2091_v20 = vmax.f32 %v2020_v61, 0.0  ;;  %v2022_v62 = vadd.f32 %v2021_v28, %v1909_v22  ;;  %v1911_v45 = vadd.f32 %v1910_v32, %v1798_v33  ;;  %v3719_v22 = vld [vmem:[#allocation12_spill] sm:$0xff] }
 0x1d2   :  { %v1914_v55 = vpop.f32.mrf.mxu0  ;;  %v2243_v25 = vadd.f32 %v2242_v12, %v2173_v1  ;;  %v1816_v1 = vadd.f32 %v3472_v18, %v3490_v8 }
 0x1d3   :  { %v2027_v39 = vpop.f32.mrf.mxu1  ;;  %v2177_v7 = vmul.f32 %v3526_v4, %v2091_v20  ;;  %v2094_v37 = vmax.f32 %v2022_v62, 0.0  ;;  %v2024_v63 = vadd.f32 %v2023_v3, %v1911_v45  ;;  %v1915_v50 = vadd.f32 %v1914_v55, %v1802_v43 }
 0x1d4   :  { %2244 = vadd.xlane.f32.xlu1 %v2243_v25  ;;  %v1916_v38 = vpop.f32.mrf.mxu0  ;;  %v2247_v41 = vadd.f32 %v3444_v40, %v2176_v52  ;;  %v1818_v52 = vadd.f32 %v3478_v53, %v3500_v54  ;;  %v3720_v25 = vld [vmem:[#allocation14_spill] sm:$0xff] }
 0x1d5   :  { %v2029_v2 = vpop.f32.mrf.mxu1  ;;  %v2180_v10 = vmul.f32 %v3519_v60, %v2094_v37  ;;  %v2095_v42 = vmax.f32 %v2024_v63, 0.0  ;;  %v2028_v29 = vadd.f32 %v2027_v39, %v1915_v50  ;;  %v1917_v31 = vadd.f32 %v1916_v38, %v1804_v26  ;;  %v3721_v50 = vld [vmem:[#allocation13_spill] sm:$0xff] }
 0x1d6   :  { %v1918_v23 = vpop.f32.mrf.mxu0  ;;  %v2248_v35 = vadd.f32 %v2247_v41, %v2177_v7  ;;  %v1822_v7 = vadd.f32 %v3720_v25, %v3490_v8 }
 0x1d7   :  { %v2031_v34 = vpop.f32.mrf.mxu1  ;;  %v2181_v17 = vmul.f32 %v3526_v4, %v2095_v42  ;;  %v2098_v11 = vmax.f32 %v2028_v29, 0.0  ;;  %v2030_v49 = vadd.f32 %v2029_v2, %v1917_v31  ;;  %v1919_v44 = vadd.f32 %v1918_v23, %v1806_v47 }
 0x1d8   :  { %2249 = vadd.xlane.f32.xlu0 %v2248_v35  ;;  %v1920_v40 = vpop.f32.mrf.mxu0  ;;  %v2252_v58 = vadd.f32 %v3718_v36, %v2180_v10  ;;  %v1824_v10 = vadd.f32 %v3492_v27, %v3500_v54 }
 0x1d9   :  { %v2033_v56 = vpop.f32.mrf.mxu1  ;;  %v2184_v59 = vmul.f32 %v3519_v60, %v2098_v11  ;;  %v2099_v51 = vmax.f32 %v2030_v49, 0.0  ;;  %v2032_v48 = vadd.f32 %v2031_v34, %v1919_v44  ;;  %v1921_v19 = vadd.f32 %v1920_v40, %v1808_v0 }
 0x1da   :  { %v1924_v5 = vpop.f32.mrf.mxu0  ;;  %v2253_v33 = vadd.f32 %v2252_v58, %v2181_v17  ;;  %v3722_v17 = vld [vmem:[#allocation16_spill] sm:$0xff] }
 0x1db   :  { %v2037_v9 = vpop.f32.mrf.mxu1  ;;  %v2185_v16 = vmul.f32 %v3526_v4, %v2099_v51  ;;  %v2102_v28 = vmax.f32 %v2032_v48, 0.0  ;;  %v2034_v57 = vadd.f32 %v2033_v56, %v1921_v19  ;;  %v1925_v6 = vadd.f32 %v1924_v5, %v1812_v15  ;;  %v3723_v15 = vld [vmem:[#allocation15_spill] sm:$0xff] }
 0x1dc   :  { %2254 = vadd.xlane.f32.xlu1 %v2253_v33  ;;  %v1926_v24 = vpop.f32.mrf.mxu0  ;;  %v2257_v43 = vadd.f32 %v3719_v22, %v2184_v59  ;;  %v1826_v11 = vadd.f32 %v3722_v17, %v3490_v8  ;;  %v1828_v59 = vadd.f32 %v3507_v30, %v3500_v54 }
 0x1dd   :  { %v2039_v61 = vpop.f32.mrf.mxu1  ;;  %v2188_v32 = vmul.f32 %v3519_v60, %v2102_v28  ;;  %v2103_v3 = vmax.f32 %v2034_v57, 0.0  ;;  %v2038_v14 = vadd.f32 %v2037_v9, %v1925_v6  ;;  %v1927_v12 = vadd.f32 %v1926_v24, %v1814_v46 }
 0x1de   :  { %v1928_v20 = vpop.f32.mrf.mxu0  ;;  %v2258_v45 = vadd.f32 %v2257_v43, %v2185_v16  ;;  %v3724_v16 = vld [vmem:[#allocation17_spill] sm:$0xff] }
 0x1df   :  { %v2041_v62 = vpop.f32.mrf.mxu1  ;;  %v2189_v26 = vmul.f32 %v3526_v4, %v2103_v3  ;;  %v2106_v55 = vmax.f32 %v2038_v14, 0.0  ;;  %v2040_v18 = vadd.f32 %v2039_v61, %v1927_v12  ;;  %v1929_v39 = vadd.f32 %v1928_v20, %v1816_v1 }
 0x1e0   :  { %2259 = vadd.xlane.f32.xlu0 %v2258_v45  ;;  %v1930_v37 = vpop.f32.mrf.mxu0  ;;  %v2262_v47 = vadd.f32 %v3721_v50, %v2188_v32  ;;  %v3644_v50 = vstv %s3705_s4 }
 0x1e1   :  { %v2043_v63 = vpop.f32.mrf.mxu1  ;;  %v2192_v38 = vmul.f32 %v3519_v60, %v2106_v55  ;;  %v2107_v2 = vmax.f32 %v2040_v18, 0.0  ;;  %v2042_v53 = vadd.f32 %v2041_v62, %v1929_v39  ;;  %v1931_v41 = vadd.f32 %v1930_v37, %v1818_v52 }
 0x1e2   :  { %v1934_v42 = vpop.f32.mrf.mxu0  ;;  %v2263_v31 = vadd.f32 %v2262_v47, %v2189_v26  ;;  %v3725_v39 = vlaneseq  ;;  %v3726_v47 = vld [vmem:[#allocation10_spill] sm:$0xff] }
 0x1e3   :  { %v2047_v29 = vpop.f32.mrf.mxu1  ;;  %v2193_v0 = vmul.f32 %v3526_v4, %v2107_v2  ;;  %v2110_v23 = vmax.f32 %v2042_v53, 0.0  ;;  %v2044_v34 = vadd.f32 %v2043_v63, %v1931_v41  ;;  %v1935_v35 = vadd.f32 %v1934_v42, %v1822_v7 }
 0x1e4   :  { %2264 = vadd.xlane.f32.xlu1 %v2263_v31  ;;  %v1936_v49 = vpop.f32.mrf.mxu0  ;;  %v2267_v40 = vadd.f32 %v3723_v15, %v2192_v38  ;;  %v3635_v25 = vand.u32 127, %v3725_v39 }
 0x1e5   :  { %v2049_v44 = vpop.f32.mrf.mxu1  ;;  %v2196_v56 = vmul.f32 %v3519_v60, %v2110_v23  ;;  %v2111_v36 = vmax.f32 %v2044_v34, 0.0  ;;  %v2048_v27 = vadd.f32 %v2047_v29, %v1935_v35  ;;  %v1937_v58 = vadd.f32 %v1936_v49, %v1824_v10 }
 0x1e6   :  { %v1938_v51 = vpop.f32.mrf.mxu0  ;;  %v2268_v19 = vadd.f32 %v2267_v40, %v2193_v0  ;;  %v2326_v7 = vadd.s32 4294967288, %v3635_v25  ;;  %v2347_v63 = vadd.s32 4294967264, %v3635_v25  ;;  %v2324_v38 = vsub.s32 %v3635_v25, %v3726_v47 }
 0x1e7   :  { %v2051_v48 = vpop.f32.mrf.mxu1  ;;  %v2197_v46 = vmul.f32 %v3526_v4, %v2111_v36  ;;  %v2114_v5 = vmax.f32 %v2048_v27, 0.0  ;;  %v2050_v8 = vadd.f32 %v2049_v44, %v1937_v58  ;;  %v1939_v9 = vadd.f32 %v1938_v51, %v1826_v11 }
 0x1e8   :  { %2269 = vadd.xlane.f32.xlu0 %v2268_v19  ;;  %v1940_v33 = vpop.f32.mrf.mxu0  ;;  %v2272_v28 = vadd.f32 %v3724_v16, %v2196_v56  ;;  %v2354_v2 = vadd.s32 4294967256, %v3635_v25  ;;  %v2329_v53 = vsub.s32 %v2326_v7, %v3726_v47  ;;  %v2361_v10 = vadd.s32 4294967248, %v3635_v25 }
 0x1e9   :  { %v2200_v57 = vmul.f32 %v3519_v60, %v2114_v5  ;;  %v2115_v6 = vmax.f32 %v2050_v8, 0.0  ;;  %v2052_v1 = vadd.f32 %v2051_v48, %v1939_v9  ;;  %v1941_v24 = vadd.f32 %v1940_v33, %v1828_v59  ;;  %v2053_v61 = vpop.f32.mrf.mxu1 }
 0x1ea   :  { %v2273_v22 = vadd.f32 %v2272_v28, %v2197_v46  ;;  %v2368_v31 = vadd.s32 4294967240, %v3635_v25  ;;  %v2350_v23 = vsub.s32 %v2347_v63, %v3726_v47  ;;  %v2375_v34 = vadd.s32 4294967232, %v3635_v25 }
 0x1eb   :  { %v2201_v30 = vmul.f32 %v3526_v4, %v2115_v6  ;;  %v2118_v54 = vmax.f32 %v2052_v1, 0.0  ;;  %v2054_v43 = vadd.f32 %v2053_v61, %v1941_v24  ;;  %v2277_v32 = vadd.f32 %v3514_v21, %v2200_v57 }
 0x1ec   :  { %2274 = vadd.xlane.f32.xlu1 %v2273_v22  ;;  %v2357_v11 = vsub.s32 %v2354_v2, %v3726_v47  ;;  %v2382_v49 = vadd.s32 4294967224, %v3635_v25  ;;  %v2364_v40 = vsub.s32 %v2361_v10, %v3726_v47  ;;  %v2371_v27 = vsub.s32 %v2368_v31, %v3726_v47 }
 0x1ed   :  { %v2204_v3 = vmul.f32 %v3519_v60, %v2118_v54  ;;  %v2119_v14 = vmax.f32 %v2054_v43, 0.0  ;;  %v2278_v12 = vadd.f32 %v2277_v32, %v2201_v30  ;;  %v2333_v60 = vadd.s32 4294967280, %v3635_v25 }
 0x1ee   :  { %v2389_v58 = vadd.s32 4294967216, %v3635_v25  ;;  %v2378_v48 = vsub.s32 %v2375_v34, %v3726_v47  ;;  %v2396_v46 = vadd.s32 4294967208, %v3635_v25  ;;  %v2385_v9 = vsub.s32 %v2382_v49, %v3726_v47 }
 0x1ef   :  { %v2205_v52 = vmul.f32 %v3526_v4, %v2119_v14  ;;  %2279 = vadd.xlane.f32.xlu0 %v2278_v12  ;;  %v2282_v20 = vadd.f32 %v3528_v13, %v2204_v3  ;;  %v2340_v4 = vadd.s32 4294967272, %v3635_v25  ;;  %v2336_v41 = vsub.s32 %v2333_v60, %v3726_v47 }
 0x1f0   :  { %v2403_v6 = vadd.s32 4294967200, %v3635_v25  ;;  %v2392_v61 = vsub.s32 %v2389_v58, %v3726_v47  ;;  %v2410_v22 = vadd.s32 4294967192, %v3635_v25  ;;  %v2399_v32 = vsub.s32 %v2396_v46, %v3726_v47 }
 0x1f1   :  { %v2283_v62 = vadd.f32 %v2282_v20, %v2205_v52  ;;  %v2343_v29 = vsub.s32 %v2340_v4, %v3726_v47  ;;  %v2417_v20 = vadd.s32 4294967184, %v3635_v25 }
 0x1f2   :  { %v2413_v60 = vsub.s32 %v2410_v22, %v3726_v47 }
 0x1f3   :  { %2284 = vadd.xlane.f32.xlu1 %v2283_v62 }
 0x241   :  { %v2210_v45 = vpop.xlane.xlu0 %2209 }
 0x242   :  { %v2288_v44 = vadd.f32 %v3644_v50, %v2210_v45 }
 0x244   :  { %v2325_v33 = vrot.slane %v2288_v44, %v2324_v38 }
 0x245   :  { %v2215_v55 = vpop.xlane.xlu0 %2214 }
 0x246   :  { %v2289_v0 = vadd.f32 %v3644_v50, %v2215_v55  ;;  %v2406_v55 = vsub.s32 %v2403_v6, %v3726_v47 }
 0x248   :  { %v2330_v59 = vrot.slane %v2289_v0, %v2329_v53  ;;  %v2420_v53 = vsub.s32 %v2417_v20, %v3726_v47 }
 0x249   :  { %v2220_v26 = vpop.xlane.xlu1 %2219 }
 0x24a   :  { %v2290_v17 = vadd.f32 %v3644_v50, %v2220_v26  ;;  %v2332_v30 = vsel %vm2331_vm0, %v2330_v59, %v2325_v33 }
 0x24c   :  { %v2337_v5 = vrot.slane %v2290_v17, %v2336_v41 }
 0x24d   :  { %v2225_v18 = vpop.xlane.xlu1 %2224 }
 0x24e   :  { %v2291_v15 = vadd.f32 %v3644_v50, %v2225_v18  ;;  %v2339_v14 = vsel %vm2338_vm1, %v2337_v5, %v2332_v30 }
 0x250   :  { %v2344_v16 = vrot.slane %v2291_v15, %v2343_v29 }
 0x251   :  { %v2230_v21 = vpop.xlane.xlu0 %2229 }
 0x252   :  { %v2292_v36 = vadd.f32 %v3644_v50, %v2230_v21  ;;  %v2346_v62 = vsel %vm2345_vm2, %v2344_v16, %v2339_v14 }
 0x254   :  { %v2351_v1 = vrot.slane %v2292_v36, %v2350_v23 }
 0x255   :  { %v2235_v37 = vpop.xlane.xlu1 %2234 }
 0x256   :  { %v2293_v51 = vadd.f32 %v3644_v50, %v2235_v37  ;;  %v2353_v39 = vsel %vm2352_vm3, %v2351_v1, %v2346_v62 }
 0x258   :  { %v2358_v54 = vrot.slane %v2293_v51, %v2357_v11 }
 0x259   :  { %v2240_v13 = vpop.xlane.xlu0 %2239 }
 0x25a   :  { %v2294_v8 = vadd.f32 %v3644_v50, %v2240_v13  ;;  %v2360_v37 = vsel %vm2359_vm4, %v2358_v54, %v2353_v39  ;;  %v2424_v13 = vadd.s32 4294967176, %v3635_v25 }
 0x25c   :  { %v2365_v12 = vrot.slane %v2294_v8, %v2364_v40  ;;  %v2427_v34 = vsub.s32 %v2424_v13, %v3726_v47 }
 0x25d   :  { %v2245_v42 = vpop.xlane.xlu1 %2244 }
 0x25e   :  { %v2295_v28 = vadd.f32 %v3644_v50, %v2245_v42  ;;  %v2367_v38 = vsel %vm2366_vm5, %v2365_v12, %v2360_v37 }
 0x260   :  { %v2372_v45 = vrot.slane %v2295_v28, %v2371_v27 }
 0x261   :  { %v2250_v35 = vpop.xlane.xlu0 %2249 }
 0x262   :  { %v2296_v24 = vadd.f32 %v3644_v50, %v2250_v35  ;;  %v2374_v10 = vsel %vm2373_vm6, %v2372_v45, %v2367_v38 }
 0x264   :  { %v2379_v21 = vrot.slane %v2296_v24, %v2378_v48 }
 0x265   :  { %v2255_v56 = vpop.xlane.xlu1 %2254 }
 0x266   :  { %v2297_v43 = vadd.f32 %v3644_v50, %v2255_v56  ;;  %v2381_v31 = vsel %vm2380_vm7, %v2379_v21, %v2374_v10 }
 0x268   :  { %v2386_v4 = vrot.slane %v2297_v43, %v2385_v9 }
 0x269   :  { %v2260_v19 = vpop.xlane.xlu0 %2259 }
 0x26a   :  { %v2298_v52 = vadd.f32 %v3644_v50, %v2260_v19  ;;  %v2388_v23 = vsel %vm2387_vm8, %v2386_v4, %v2381_v31 }
 0x26c   :  { %v2393_v2 = vrot.slane %v2298_v52, %v2392_v61 }
 0x26d   :  { %v2265_v57 = vpop.xlane.xlu1 %2264 }
 0x26e   :  { %v2299_v26 = vadd.f32 %v3644_v50, %v2265_v57  ;;  %v2395_v35 = vsel %vm2394_vm9, %v2393_v2, %v2388_v23 }
 0x270   :  { %v2400_v42 = vrot.slane %v2299_v26, %v2399_v32 }
 0x271   :  { %v2270_v3 = vpop.xlane.xlu0 %2269 }
 0x272   :  { %v2300_v7 = vadd.f32 %v3644_v50, %v2270_v3  ;;  %v2402_v49 = vsel %vm2401_vm10, %v2400_v42, %v2395_v35 }
 0x274   :  { %v2407_v0 = vrot.slane %v2300_v7, %v2406_v55 }
 0x275   :  { %v2275_v18 = vpop.xlane.xlu1 %2274 }
 0x276   :  { %v2301_v63 = vadd.f32 %v3644_v50, %v2275_v18  ;;  %v2409_v15 = vsel %vm2408_vm11, %v2407_v0, %v2402_v49 }
 0x278   :  { %v2280_v41 = vpop.xlane.xlu0 %2279  ;;  %v2414_v25 = vrot.slane %v2301_v63, %v2413_v60 }
 0x279   :  { %v2302_v29 = vadd.f32 %v3644_v50, %v2280_v41 }
 0x27a   :  { %v2416_v40 = vsel %vm2415_vm12, %v2414_v25, %v2409_v15 }
 0x27b   :  { %v2421_v17 = vrot.slane %v2302_v29, %v2420_v53 }
 0x27c   :  { %v2285_v11 = vpop.xlane.xlu1 %2284 }
 0x27d   :  { %v2303_v44 = vadd.f32 %v3644_v50, %v2285_v11  ;;  %v2423_v36 = vsel %vm2422_vm13, %v2421_v17, %v2416_v40 }
 0x27f   :  { %v2428_v56 = vrot.slane %v2303_v44, %v2427_v34 }
 0x281   :  { %v2430_v27 = vsel %vm2429_vm14, %v2428_v56, %v2423_v36 }
 0x282   :  { %2432 = vst [vmem:[%s3706_s5] sm:$0x1] %v2430_v27 }
 0x283   :  { %2437 = vsyncpa [#allocation4], 1 }
 0x284   :  { %2438 = vsyncpa [#allocation6], 1 }

</bundles_post_ra>
